<compile_context>
chip_gen: v6e
topology: v6e:2x2x1
jax: 0.10.0
libtpu: 0.0.40
codegen_flags: <defaults>
</compile_context>

<pallas_src>
import functools

import jax
import jax.numpy as jnp
import numpy as np
from jax.experimental import pallas as pl
from jax.experimental.pallas import tpu as pltpu


def attention_kernel(x_ref, h_ref, we_ref, wd_ref, bias_ref, wf_ref,
                     sel_ref, g2_ref, bsel_ref, awe_ref, alpha_ref, *, bt):
    """One grid step: bt batch elements x P pixels (R = bt*P flattened rows)."""
    f32 = jnp.float32

    x = x_ref[...]                      # (R, E)  batch*pixels, flattened in wrapper
    h = h_ref[...]                      # (bt, D)

    # --- encoder_att / decoder_att linear layers on the MXU -----------------
    att1 = jnp.dot(x, we_ref[...], preferred_element_type=f32)          # (R, A)
    # Fold (be + bd) into att2 here: a tiny (bt, A) add; sel rows each have
    # exactly one 1 so the bias propagates exactly through the broadcast.
    att2 = jnp.dot(h, wd_ref[...], preferred_element_type=f32) + bias_ref[...]
    # Broadcast att2 over the P pixel rows of each batch element with a tiny
    # K=bt selection matmul (mask precomputed host-side).
    att2_rep = jnp.dot(sel_ref[...], att2, preferred_element_type=f32)  # (R, A)

    a = jnp.maximum(att1 + att2_rep, 0.0)                               # (R, A)

    # --- full_att as VPU multiply + lane reduction over A (no N=1 MXU pass);
    #     full_att bias dropped (softmax-invariant) ----------------------------
    z = jnp.sum(a * wf_ref[...], axis=-1, keepdims=True)                # (R, 1)

    # Re-layout (R,1) -> (bt, P) with pixels on the LANE axis: one multiply
    # against the precomputed g2 mask + one thin MXU matmul against bsel.
    logits = jnp.dot(bsel_ref[...], z * g2_ref[...],
                     preferred_element_type=f32)                        # (bt, P)

    # --- softmax over pixels (lane axis), fully dense vregs -----------------
    m = jnp.max(logits, axis=-1, keepdims=True)                         # (bt, 1)
    e = jnp.exp(logits - m)                                             # (bt, P)
    s = jnp.sum(e, axis=-1, keepdims=True)                              # (bt, 1)
    inv = pl.reciprocal(s, approx=True)               # EUP vrcp (free slot)
    inv = inv * (2.0 - s * inv)                       # one Newton step -> f32 acc.
    alpha = e * inv                                                     # (bt, P)
    alpha_ref[...] = alpha.astype(alpha_ref.dtype)

    # --- attention-weighted encoding on the MXU: block-diag(alpha) @ x ------
    # (fine at bt <= ~16; switch to a batched dot_general if bt grows, since
    #  wasted MXU K-work here scales as bt^2.)
    alpha_bd = jnp.tile(alpha, (1, bt)) * bsel_ref[...]                 # (bt, R)
    awe = jnp.dot(alpha_bd.astype(x.dtype), x, preferred_element_type=f32)
    awe_ref[...] = awe.astype(awe_ref.dtype)                            # (bt, E)


def attention_forward(encoder_out, decoder_hidden, params, *,
                      batch_tile=None, matmul_dtype=jnp.bfloat16,
                      vmem_limit_bytes=None):
    """encoder_out: (B, P, E) f32, decoder_hidden: (B, D) f32.

    Returns (attention_weighted_encoding (B, E), alpha (B, P))."""
    B, P, E = encoder_out.shape
    D = decoder_hidden.shape[1]
    A = params["we_t"].shape[1]

    if batch_tile is None:
        # Prefer >= 2 (even) grid steps so the single "parallel" axis can be
        # sharded across both v7x TensorCores / megacore.
        half = B // 2
        bt = half if (B % 2 == 0 and half % 8 == 0) else B
    else:
        bt = batch_tile
    assert B % bt == 0, "batch must divide evenly into batch tiles"
    assert bt == B or bt % 8 == 0, \
        "batch_tile must be 8-aligned (sublane dim) unless it spans the batch"
    n_steps = B // bt
    R = bt * P

    # Flatten batch*pixels in the wrapper -> big matmul M dim = bt*P.
    enc_flat = encoder_out.reshape(B * P, E).astype(matmul_dtype)
    dec = decoder_hidden.astype(matmul_dtype)
    we = params["we_t"].astype(matmul_dtype)                    # (E, A)
    wd = params["wd_t"].astype(matmul_dtype)                    # (D, A)
    bias = (params["be"] + params["bd"]).astype(jnp.float32)    # (1, A) folded
    wf_row = params["wf_t"].reshape(1, A).astype(jnp.float32)   # (1, A)
    # (full_att bias intentionally not passed: the softmax cancels it exactly)

    # Host-side constant masks (depend only on bt, P) -- hoisted out of the
    # per-step kernel body. In a real model cache these per (bt, P).
    rows = np.arange(R)
    b_of_row = rows // P
    pix_of_row = rows % P
    sel_np = (b_of_row[:, None] == np.arange(bt)[None, :]).astype(np.float32)  # (R, bt)
    g2_np = (pix_of_row[:, None] == np.arange(P)[None, :]).astype(np.float32)  # (R, P)
    bsel_np = np.ascontiguousarray(sel_np.T)                                    # (bt, R)
    sel, g2, bsel = jnp.asarray(sel_np), jnp.asarray(g2_np), jnp.asarray(bsel_np)

    kernel = functools.partial(attention_kernel, bt=bt)

    cp_kwargs = dict(dimension_semantics=("parallel",))   # megacore / v7x 2 TCs
    if vmem_limit_bytes is not None:
        cp_kwargs["vmem_limit_bytes"] = vmem_limit_bytes
    compiler_params = pltpu.CompilerParams(**cp_kwargs)

    out_shape = (
        jax.ShapeDtypeStruct((B, E), jnp.float32),
        jax.ShapeDtypeStruct((B, P), jnp.float32),
    )

    def _call(single_buffer_consts):
        # Constant-index resident inputs: single-buffer them when supported.
        ckw = dict(pipeline_mode=pl.Buffered(1)) if single_buffer_consts else {}

        def const(shape):
            return pl.BlockSpec(shape, lambda g: (0, 0), **ckw)

        in_specs = [
            pl.BlockSpec((R, E), lambda g: (g, 0)),     # encoder_out (flattened)
            pl.BlockSpec((bt, D), lambda g: (g, 0)),    # decoder_hidden
            const((E, A)),                              # W_enc^T (resident)
            const((D, A)),                              # W_dec^T (resident)
            const((1, A)),                              # be + bd
            const((1, A)),                              # w_full as a row
            const((R, bt)),                             # sel mask  (hoisted)
            const((R, P)),                              # g2 mask   (hoisted)
            const((bt, R)),                             # bsel mask (hoisted)
        ]
        out_specs = [
            pl.BlockSpec((bt, E), lambda g: (g, 0)),    # awe   (lane-dense)
            pl.BlockSpec((bt, P), lambda g: (g, 0)),    # alpha (lane-dense)
        ]
        grid_spec = pltpu.PrefetchScalarGridSpec(
            num_scalar_prefetch=0, grid=(n_steps,),
            in_specs=in_specs, out_specs=out_specs)
        return pl.pallas_call(
            kernel, out_shape=out_shape, grid_spec=grid_spec,
            compiler_params=compiler_params,
        )(enc_flat, dec, we, wd, bias, wf_row, sel, g2, bsel)

    try:
        return _call(True)
    except Exception:
        # pipeline_mode=pl.Buffered(1) not supported by this jax build: fall
        # back to default double-buffering for the resident constants
        # (identical results, ~2x VMEM for the constant operands).
        return _call(False)


def init_params(key, encoder_dim, decoder_dim, attention_dim):
    """Deterministic init mimicking nn.Linear's uniform(-1/sqrt(fan_in), +)."""
    ks = jax.random.split(key, 6)

    def lin(kw, kb, fan_in, fan_out):
        bound = 1.0 / np.sqrt(fan_in)
        w = jax.random.uniform(kw, (fan_in, fan_out), jnp.float32, -bound, bound)
        b = jax.random.uniform(kb, (1, fan_out), jnp.float32, -bound, bound)
        return w, b

    we_t, be = lin(ks[0], ks[1], encoder_dim, attention_dim)
    wd_t, bd = lin(ks[2], ks[3], decoder_dim, attention_dim)
    wf_t, bf = lin(ks[4], ks[5], attention_dim, 1)
    return {"we_t": we_t, "be": be,
            "wd_t": wd_t, "bd": bd,
            "wf_t": wf_t, "bf": bf}


def reference_forward(encoder_out, decoder_hidden, p):
    att1 = encoder_out @ p["we_t"] + p["be"][0]                 # (B, P, A)
    att2 = decoder_hidden @ p["wd_t"] + p["bd"][0]              # (B, A)
    att = jnp.maximum(att1 + att2[:, None, :], 0.0) @ p["wf_t"] + p["bf"][0]
    att = att[..., 0]                                           # (B, P)
    alpha = jax.nn.softmax(att, axis=1)
    awe = jnp.sum(encoder_out * alpha[:, :, None], axis=1)      # (B, E)
    return awe, alpha


if __name__ == "__main__":
    # Small shapes consistent with the module's forward signature.
    # (Realistic dims are P~196, E~2048, A~512 -- tune batch_tile there.)
    B, P = 16, 16           # batch, num_pixels
    E, D, A = 32, 16, 32    # encoder_dim, decoder_dim, attention_dim
    BT = 8                  # batch tile -> 2 even grid steps (v7x 2-TC friendly)

    root = jax.random.PRNGKey(0)
    k_enc, k_dec, k_par = jax.random.split(root, 3)

    encoder_out = jax.random.normal(k_enc, (B, P, E), jnp.float32)
    decoder_hidden = jax.random.normal(k_dec, (B, D), jnp.float32)
    params = init_params(k_par, E, D, A)

    awe_ref_v, alpha_ref_v = reference_forward(encoder_out, decoder_hidden, params)

    # f32 MXU path: tight check against the f32 reference.
    awe32, alpha32 = attention_forward(encoder_out, decoder_hidden, params,
                                       batch_tile=BT, matmul_dtype=jnp.float32)
    jax.block_until_ready((awe32, alpha32))
    np.testing.assert_allclose(np.asarray(awe32), np.asarray(awe_ref_v),
                               rtol=1e-5, atol=1e-5)
    np.testing.assert_allclose(np.asarray(alpha32), np.asarray(alpha_ref_v),
                               rtol=1e-5, atol=1e-5)

    # Default (bf16 MXU inputs) path: VPU/softmax math stays f32, so only a
    # mildly looser tolerance is needed.
    awe16, alpha16 = attention_forward(encoder_out, decoder_hidden, params,
                                       batch_tile=BT)
    jax.block_until_ready((awe16, alpha16))
    np.testing.assert_allclose(np.asarray(awe16), np.asarray(awe_ref_v),
                               rtol=5e-2, atol=2e-2)
    np.testing.assert_allclose(np.asarray(alpha16), np.asarray(alpha_ref_v),
                               rtol=5e-2, atol=2e-2)

    print("KERNEL_OK")
</pallas_src>

<mosaic_0001>
module attributes {stable_mosaic.version = 11 : i64} {
  func.func @attention_kernel(%arg0: i32, %arg1: memref<128x32xf32, #tpu.memory_space<vmem>>, %arg2: memref<8x16xf32, #tpu.memory_space<vmem>>, %arg3: memref<32x32xf32, #tpu.memory_space<vmem>>, %arg4: memref<16x32xf32, #tpu.memory_space<vmem>>, %arg5: memref<1x32xf32, #tpu.memory_space<vmem>>, %arg6: memref<1x32xf32, #tpu.memory_space<vmem>>, %arg7: memref<128x8xf32, #tpu.memory_space<vmem>>, %arg8: memref<128x16xf32, #tpu.memory_space<vmem>>, %arg9: memref<8x128xf32, #tpu.memory_space<vmem>>, %arg10: memref<8x32xf32, #tpu.memory_space<vmem>>, %arg11: memref<8x16xf32, #tpu.memory_space<vmem>>) attributes {dimension_semantics = [#tpu.dimension_semantics<parallel>], iteration_bounds = array<i64: 2>, scalar_prefetch = 0 : i64, scratch_operands = 0 : i64, tpu.core_type = #tpu.core_type<tc>, window_params = [{transform_indices = @transform_0, window_bounds = array<i64: 128, 32>}, {transform_indices = @transform_1, window_bounds = array<i64: 8, 16>}, {pipeline_mode = #tpu.pipeline_mode<synchronous>, transform_indices = @transform_2, window_bounds = array<i64: 32, 32>}, {pipeline_mode = #tpu.pipeline_mode<synchronous>, transform_indices = @transform_3, window_bounds = array<i64: 16, 32>}, {pipeline_mode = #tpu.pipeline_mode<synchronous>, transform_indices = @transform_4, window_bounds = array<i64: 1, 32>}, {pipeline_mode = #tpu.pipeline_mode<synchronous>, transform_indices = @transform_5, window_bounds = array<i64: 1, 32>}, {pipeline_mode = #tpu.pipeline_mode<synchronous>, transform_indices = @transform_6, window_bounds = array<i64: 128, 8>}, {pipeline_mode = #tpu.pipeline_mode<synchronous>, transform_indices = @transform_7, window_bounds = array<i64: 128, 16>}, {pipeline_mode = #tpu.pipeline_mode<synchronous>, transform_indices = @transform_8, window_bounds = array<i64: 8, 128>}, {transform_indices = @transform_9, window_bounds = array<i64: 8, 32>}, {transform_indices = @transform_10, window_bounds = array<i64: 8, 16>}]} {
    %c0 = arith.constant 0 : index
    %c0_0 = arith.constant 0 : index
    %0 = vector.load %arg1[%c0, %c0_0] : memref<128x32xf32, #tpu.memory_space<vmem>>, vector<128x32xf32>
    %c0_1 = arith.constant 0 : index
    %c0_2 = arith.constant 0 : index
    %1 = vector.load %arg2[%c0_1, %c0_2] : memref<8x16xf32, #tpu.memory_space<vmem>>, vector<8x16xf32>
    %c0_3 = arith.constant 0 : index
    %c0_4 = arith.constant 0 : index
    %2 = vector.load %arg3[%c0_3, %c0_4] : memref<32x32xf32, #tpu.memory_space<vmem>>, vector<32x32xf32>
    %cst = arith.constant dense<0.000000e+00> : vector<128x32xf32>
    %3 = tpu.matmul %0, %2, %cst {dimension_numbers = #tpu.dot_dimension_numbers<[1], [0], [0], [1], [0, 0, 1, 1], [], []>} : vector<128x32xf32>, vector<32x32xf32>, vector<128x32xf32> -> vector<128x32xf32>
    %c0_5 = arith.constant 0 : index
    %c0_6 = arith.constant 0 : index
    %4 = vector.load %arg4[%c0_5, %c0_6] : memref<16x32xf32, #tpu.memory_space<vmem>>, vector<16x32xf32>
    %cst_7 = arith.constant dense<0.000000e+00> : vector<8x32xf32>
    %5 = tpu.matmul %1, %4, %cst_7 {dimension_numbers = #tpu.dot_dimension_numbers<[1], [0], [0], [1], [0, 0, 1, 1], [], []>} : vector<8x16xf32>, vector<16x32xf32>, vector<8x32xf32> -> vector<8x32xf32>
    %c0_8 = arith.constant 0 : index
    %c0_9 = arith.constant 0 : index
    %6 = vector.load %arg5[%c0_8, %c0_9] : memref<1x32xf32, #tpu.memory_space<vmem>>, vector<1x32xf32>
    %7 = vector.broadcast %6 : vector<1x32xf32> to vector<8x32xf32>
    %8 = arith.addf %5, %7 : vector<8x32xf32>
    %c0_10 = arith.constant 0 : index
    %c0_11 = arith.constant 0 : index
    %9 = vector.load %arg7[%c0_10, %c0_11] : memref<128x8xf32, #tpu.memory_space<vmem>>, vector<128x8xf32>
    %cst_12 = arith.constant dense<0.000000e+00> : vector<128x32xf32>
    %10 = tpu.matmul %9, %8, %cst_12 {dimension_numbers = #tpu.dot_dimension_numbers<[1], [0], [0], [1], [0, 0, 1, 1], [], []>} : vector<128x8xf32>, vector<8x32xf32>, vector<128x32xf32> -> vector<128x32xf32>
    %11 = arith.addf %3, %10 : vector<128x32xf32>
    %cst_13 = arith.constant 0.000000e+00 : f32
    %12 = vector.broadcast %cst_13 : f32 to vector<128x32xf32>
    %13 = arith.maximumf %11, %12 : vector<128x32xf32>
    %c0_14 = arith.constant 0 : index
    %c0_15 = arith.constant 0 : index
    %14 = vector.load %arg6[%c0_14, %c0_15] : memref<1x32xf32, #tpu.memory_space<vmem>>, vector<1x32xf32>
    %15 = vector.broadcast %14 : vector<1x32xf32> to vector<128x32xf32>
    %16 = arith.mulf %13, %15 : vector<128x32xf32>
    %cst_16 = arith.constant dense<0.000000e+00> : vector<128xf32>
    %17 = vector.multi_reduction <add>, %16, %cst_16 [1] : vector<128x32xf32> to vector<128xf32>
    %18 = vector.shape_cast %17 : vector<128xf32> to vector<128x1xf32>
    %c0_17 = arith.constant 0 : index
    %c0_18 = arith.constant 0 : index
    %19 = vector.load %arg9[%c0_17, %c0_18] : memref<8x128xf32, #tpu.memory_space<vmem>>, vector<8x128xf32>
    %c0_19 = arith.constant 0 : index
    %c0_20 = arith.constant 0 : index
    %20 = vector.load %arg8[%c0_19, %c0_20] : memref<128x16xf32, #tpu.memory_space<vmem>>, vector<128x16xf32>
    %21 = vector.broadcast %18 : vector<128x1xf32> to vector<128x16xf32>
    %22 = arith.mulf %21, %20 : vector<128x16xf32>
    %cst_21 = arith.constant dense<0.000000e+00> : vector<8x16xf32>
    %23 = tpu.matmul %19, %22, %cst_21 {dimension_numbers = #tpu.dot_dimension_numbers<[1], [0], [0], [1], [0, 0, 1, 1], [], []>} : vector<8x128xf32>, vector<128x16xf32>, vector<8x16xf32> -> vector<8x16xf32>
    %cst_22 = arith.constant dense<0xFF800000> : vector<8xf32>
    %24 = vector.multi_reduction <maximumf>, %23, %cst_22 [1] : vector<8x16xf32> to vector<8xf32>
    %25 = vector.shape_cast %24 : vector<8xf32> to vector<8x1xf32>
    %26 = vector.broadcast %25 : vector<8x1xf32> to vector<8x16xf32>
    %27 = arith.subf %23, %26 : vector<8x16xf32>
    %28 = math.exp %27 : vector<8x16xf32>
    %cst_23 = arith.constant dense<0.000000e+00> : vector<8xf32>
    %29 = vector.multi_reduction <add>, %28, %cst_23 [1] : vector<8x16xf32> to vector<8xf32>
    %30 = vector.shape_cast %29 : vector<8xf32> to vector<8x1xf32>
    %31 = tpu.reciprocal %30 {approx = true} : vector<8x1xf32> -> vector<8x1xf32>
    %32 = arith.mulf %30, %31 : vector<8x1xf32>
    %cst_24 = arith.constant 2.000000e+00 : f32
    %33 = vector.broadcast %cst_24 : f32 to vector<8x1xf32>
    %34 = arith.subf %33, %32 : vector<8x1xf32>
    %35 = arith.mulf %31, %34 : vector<8x1xf32>
    %36 = vector.broadcast %35 : vector<8x1xf32> to vector<8x16xf32>
    %37 = arith.mulf %28, %36 : vector<8x16xf32>
    %c0_25 = arith.constant 0 : index
    %c0_26 = arith.constant 0 : index
    %38 = vector.load %arg11[%c0_25, %c0_26] : memref<8x16xf32, #tpu.memory_space<vmem>>, vector<8x16xf32>
    tpu.vector_store %arg11[%c0_25, %c0_26], %37 {strides = array<i32>} : memref<8x16xf32, #tpu.memory_space<vmem>>, vector<8x16xf32>,
    %39 = tpu.concatenate %37, %37, %37, %37, %37, %37, %37, %37 in 1 : vector<8x16xf32>, vector<8x16xf32>, vector<8x16xf32>, vector<8x16xf32>, vector<8x16xf32>, vector<8x16xf32>, vector<8x16xf32>, vector<8x16xf32> -> vector<8x128xf32>
    %c0_27 = arith.constant 0 : index
    %c0_28 = arith.constant 0 : index
    %40 = vector.load %arg9[%c0_27, %c0_28] : memref<8x128xf32, #tpu.memory_space<vmem>>, vector<8x128xf32>
    %41 = arith.mulf %39, %40 : vector<8x128xf32>
    %cst_29 = arith.constant dense<0.000000e+00> : vector<8x32xf32>
    %42 = tpu.matmul %41, %0, %cst_29 {dimension_numbers = #tpu.dot_dimension_numbers<[1], [0], [0], [1], [0, 0, 1, 1], [], []>} : vector<8x128xf32>, vector<128x32xf32>, vector<8x32xf32> -> vector<8x32xf32>
    %c0_30 = arith.constant 0 : index
    %c0_31 = arith.constant 0 : index
    %43 = vector.load %arg10[%c0_30, %c0_31] : memref<8x32xf32, #tpu.memory_space<vmem>>, vector<8x32xf32>
    tpu.vector_store %arg10[%c0_30, %c0_31], %42 {strides = array<i32>} : memref<8x32xf32, #tpu.memory_space<vmem>>, vector<8x32xf32>,
    return
  }
  func.func @transform_0(%arg0: i32) -> (i32, i32) {
    %c0_i32 = arith.constant 0 : i32
    %c0_i32_0 = arith.constant 0 : i32
    return %arg0, %c0_i32 : i32, i32
  }
  func.func @transform_1(%arg0: i32) -> (i32, i32) {
    %c0_i32 = arith.constant 0 : i32
    %c0_i32_0 = arith.constant 0 : i32
    return %arg0, %c0_i32 : i32, i32
  }
  func.func @transform_2(%arg0: i32) -> (i32, i32) {
    %c0_i32 = arith.constant 0 : i32
    %c0_i32_0 = arith.constant 0 : i32
    %c0_i32_1 = arith.constant 0 : i32
    return %c0_i32, %c0_i32_0 : i32, i32
  }
  func.func @transform_3(%arg0: i32) -> (i32, i32) {
    %c0_i32 = arith.constant 0 : i32
    %c0_i32_0 = arith.constant 0 : i32
    %c0_i32_1 = arith.constant 0 : i32
    return %c0_i32, %c0_i32_0 : i32, i32
  }
  func.func @transform_4(%arg0: i32) -> (i32, i32) {
    %c0_i32 = arith.constant 0 : i32
    %c0_i32_0 = arith.constant 0 : i32
    %c0_i32_1 = arith.constant 0 : i32
    return %c0_i32, %c0_i32_0 : i32, i32
  }
  func.func @transform_5(%arg0: i32) -> (i32, i32) {
    %c0_i32 = arith.constant 0 : i32
    %c0_i32_0 = arith.constant 0 : i32
    %c0_i32_1 = arith.constant 0 : i32
    return %c0_i32, %c0_i32_0 : i32, i32
  }
  func.func @transform_6(%arg0: i32) -> (i32, i32) {
    %c0_i32 = arith.constant 0 : i32
    %c0_i32_0 = arith.constant 0 : i32
    %c0_i32_1 = arith.constant 0 : i32
    return %c0_i32, %c0_i32_0 : i32, i32
  }
  func.func @transform_7(%arg0: i32) -> (i32, i32) {
    %c0_i32 = arith.constant 0 : i32
    %c0_i32_0 = arith.constant 0 : i32
    %c0_i32_1 = arith.constant 0 : i32
    return %c0_i32, %c0_i32_0 : i32, i32
  }
  func.func @transform_8(%arg0: i32) -> (i32, i32) {
    %c0_i32 = arith.constant 0 : i32
    %c0_i32_0 = arith.constant 0 : i32
    %c0_i32_1 = arith.constant 0 : i32
    return %c0_i32, %c0_i32_0 : i32, i32
  }
  func.func @transform_9(%arg0: i32) -> (i32, i32) {
    %c0_i32 = arith.constant 0 : i32
    %c0_i32_0 = arith.constant 0 : i32
    return %arg0, %c0_i32 : i32, i32
  }
  func.func @transform_10(%arg0: i32) -> (i32, i32) {
    %c0_i32 = arith.constant 0 : i32
    %c0_i32_0 = arith.constant 0 : i32
    return %arg0, %c0_i32 : i32, i32
  }
}

module attributes {stable_mosaic.version = 11 : i64} {
  func.func @attention_kernel(%arg0: i32, %arg1: memref<128x32xf32, #tpu.memory_space<vmem>>, %arg2: memref<8x16xf32, #tpu.memory_space<vmem>>, %arg3: memref<32x32xf32, #tpu.memory_space<vmem>>, %arg4: memref<16x32xf32, #tpu.memory_space<vmem>>, %arg5: memref<1x32xf32, #tpu.memory_space<vmem>>, %arg6: memref<1x32xf32, #tpu.memory_space<vmem>>, %arg7: memref<128x8xf32, #tpu.memory_space<vmem>>, %arg8: memref<128x16xf32, #tpu.memory_space<vmem>>, %arg9: memref<8x128xf32, #tpu.memory_space<vmem>>, %arg10: memref<8x32xf32, #tpu.memory_space<vmem>>, %arg11: memref<8x16xf32, #tpu.memory_space<vmem>>) attributes {dimension_semantics = [#tpu.dimension_semantics<parallel>], iteration_bounds = array<i64: 2>, scalar_prefetch = 0 : i64, scratch_operands = 0 : i64, tpu.core_type = #tpu.core_type<tc>, window_params = [{transform_indices = @transform_0, window_bounds = array<i64: 128, 32>}, {transform_indices = @transform_1, window_bounds = array<i64: 8, 16>}, {pipeline_mode = #tpu.pipeline_mode<synchronous>, transform_indices = @transform_2, window_bounds = array<i64: 32, 32>}, {pipeline_mode = #tpu.pipeline_mode<synchronous>, transform_indices = @transform_3, window_bounds = array<i64: 16, 32>}, {pipeline_mode = #tpu.pipeline_mode<synchronous>, transform_indices = @transform_4, window_bounds = array<i64: 1, 32>}, {pipeline_mode = #tpu.pipeline_mode<synchronous>, transform_indices = @transform_5, window_bounds = array<i64: 1, 32>}, {pipeline_mode = #tpu.pipeline_mode<synchronous>, transform_indices = @transform_6, window_bounds = array<i64: 128, 8>}, {pipeline_mode = #tpu.pipeline_mode<synchronous>, transform_indices = @transform_7, window_bounds = array<i64: 128, 16>}, {pipeline_mode = #tpu.pipeline_mode<synchronous>, transform_indices = @transform_8, window_bounds = array<i64: 8, 128>}, {transform_indices = @transform_9, window_bounds = array<i64: 8, 32>}, {transform_indices = @transform_10, window_bounds = array<i64: 8, 16>}]} {
    %c0 = arith.constant 0 : index
    %c0_0 = arith.constant 0 : index
    %0 = vector.load %arg1[%c0, %c0_0] : memref<128x32xf32, #tpu.memory_space<vmem>>, vector<128x32xf32>
    %c0_1 = arith.constant 0 : index
    %c0_2 = arith.constant 0 : index
    %1 = vector.load %arg2[%c0_1, %c0_2] : memref<8x16xf32, #tpu.memory_space<vmem>>, vector<8x16xf32>
    %c0_3 = arith.constant 0 : index
    %c0_4 = arith.constant 0 : index
    %2 = vector.load %arg3[%c0_3, %c0_4] : memref<32x32xf32, #tpu.memory_space<vmem>>, vector<32x32xf32>
    %cst = arith.constant dense<0.000000e+00> : vector<128x32xf32>
    %3 = tpu.matmul %0, %2, %cst {dimension_numbers = #tpu.dot_dimension_numbers<[1], [0], [0], [1], [0, 0, 1, 1], [], []>} : vector<128x32xf32>, vector<32x32xf32>, vector<128x32xf32> -> vector<128x32xf32>
    %c0_5 = arith.constant 0 : index
    %c0_6 = arith.constant 0 : index
    %4 = vector.load %arg4[%c0_5, %c0_6] : memref<16x32xf32, #tpu.memory_space<vmem>>, vector<16x32xf32>
    %cst_7 = arith.constant dense<0.000000e+00> : vector<8x32xf32>
    %5 = tpu.matmul %1, %4, %cst_7 {dimension_numbers = #tpu.dot_dimension_numbers<[1], [0], [0], [1], [0, 0, 1, 1], [], []>} : vector<8x16xf32>, vector<16x32xf32>, vector<8x32xf32> -> vector<8x32xf32>
    %c0_8 = arith.constant 0 : index
    %c0_9 = arith.constant 0 : index
    %6 = vector.load %arg5[%c0_8, %c0_9] : memref<1x32xf32, #tpu.memory_space<vmem>>, vector<1x32xf32>
    %7 = vector.broadcast %6 : vector<1x32xf32> to vector<8x32xf32>
    %8 = arith.addf %5, %7 : vector<8x32xf32>
    %c0_10 = arith.constant 0 : index
    %c0_11 = arith.constant 0 : index
    %9 = vector.load %arg7[%c0_10, %c0_11] : memref<128x8xf32, #tpu.memory_space<vmem>>, vector<128x8xf32>
    %cst_12 = arith.constant dense<0.000000e+00> : vector<128x32xf32>
    %10 = tpu.matmul %9, %8, %cst_12 {dimension_numbers = #tpu.dot_dimension_numbers<[1], [0], [0], [1], [0, 0, 1, 1], [], []>} : vector<128x8xf32>, vector<8x32xf32>, vector<128x32xf32> -> vector<128x32xf32>
    %11 = arith.addf %3, %10 : vector<128x32xf32>
    %cst_13 = arith.constant 0.000000e+00 : f32
    %12 = vector.broadcast %cst_13 : f32 to vector<128x32xf32>
    %13 = arith.maximumf %11, %12 : vector<128x32xf32>
    %c0_14 = arith.constant 0 : index
    %c0_15 = arith.constant 0 : index
    %14 = vector.load %arg6[%c0_14, %c0_15] : memref<1x32xf32, #tpu.memory_space<vmem>>, vector<1x32xf32>
    %15 = vector.broadcast %14 : vector<1x32xf32> to vector<128x32xf32>
    %16 = arith.mulf %13, %15 : vector<128x32xf32>
    %cst_16 = arith.constant dense<0.000000e+00> : vector<128xf32>
    %17 = vector.multi_reduction <add>, %16, %cst_16 [1] : vector<128x32xf32> to vector<128xf32>
    %18 = vector.shape_cast %17 : vector<128xf32> to vector<128x1xf32>
    %c0_17 = arith.constant 0 : index
    %c0_18 = arith.constant 0 : index
    %19 = vector.load %arg9[%c0_17, %c0_18] : memref<8x128xf32, #tpu.memory_space<vmem>>, vector<8x128xf32>
    %c0_19 = arith.constant 0 : index
    %c0_20 = arith.constant 0 : index
    %20 = vector.load %arg8[%c0_19, %c0_20] : memref<128x16xf32, #tpu.memory_space<vmem>>, vector<128x16xf32>
    %21 = vector.broadcast %18 : vector<128x1xf32> to vector<128x16xf32>
    %22 = arith.mulf %21, %20 : vector<128x16xf32>
    %cst_21 = arith.constant dense<0.000000e+00> : vector<8x16xf32>
    %23 = tpu.matmul %19, %22, %cst_21 {dimension_numbers = #tpu.dot_dimension_numbers<[1], [0], [0], [1], [0, 0, 1, 1], [], []>} : vector<8x128xf32>, vector<128x16xf32>, vector<8x16xf32> -> vector<8x16xf32>
    %cst_22 = arith.constant dense<0xFF800000> : vector<8xf32>
    %24 = vector.multi_reduction <maximumf>, %23, %cst_22 [1] : vector<8x16xf32> to vector<8xf32>
    %25 = vector.shape_cast %24 : vector<8xf32> to vector<8x1xf32>
    %26 = vector.broadcast %25 : vector<8x1xf32> to vector<8x16xf32>
    %27 = arith.subf %23, %26 : vector<8x16xf32>
    %28 = math.exp %27 : vector<8x16xf32>
    %cst_23 = arith.constant dense<0.000000e+00> : vector<8xf32>
    %29 = vector.multi_reduction <add>, %28, %cst_23 [1] : vector<8x16xf32> to vector<8xf32>
    %30 = vector.shape_cast %29 : vector<8xf32> to vector<8x1xf32>
    %31 = tpu.reciprocal %30 {approx = true} : vector<8x1xf32> -> vector<8x1xf32>
    %32 = arith.mulf %30, %31 : vector<8x1xf32>
    %cst_24 = arith.constant 2.000000e+00 : f32
    %33 = vector.broadcast %cst_24 : f32 to vector<8x1xf32>
    %34 = arith.subf %33, %32 : vector<8x1xf32>
    %35 = arith.mulf %31, %34 : vector<8x1xf32>
    %36 = vector.broadcast %35 : vector<8x1xf32> to vector<8x16xf32>
    %37 = arith.mulf %28, %36 : vector<8x16xf32>
    %c0_25 = arith.constant 0 : index
    %c0_26 = arith.constant 0 : index
    %38 = vector.load %arg11[%c0_25, %c0_26] : memref<8x16xf32, #tpu.memory_space<vmem>>, vector<8x16xf32>
    tpu.vector_store %arg11[%c0_25, %c0_26], %37 {strides = array<i32>} : memref<8x16xf32, #tpu.memory_space<vmem>>, vector<8x16xf32>,
    %39 = tpu.concatenate %37, %37, %37, %37, %37, %37, %37, %37 in 1 : vector<8x16xf32>, vector<8x16xf32>, vector<8x16xf32>, vector<8x16xf32>, vector<8x16xf32>, vector<8x16xf32>, vector<8x16xf32>, vector<8x16xf32> -> vector<8x128xf32>
    %c0_27 = arith.constant 0 : index
    %c0_28 = arith.constant 0 : index
    %40 = vector.load %arg9[%c0_27, %c0_28] : memref<8x128xf32, #tpu.memory_space<vmem>>, vector<8x128xf32>
    %41 = arith.mulf %39, %40 : vector<8x128xf32>
    %cst_29 = arith.constant dense<0.000000e+00> : vector<8x32xf32>
    %42 = tpu.matmul %41, %0, %cst_29 {dimension_numbers = #tpu.dot_dimension_numbers<[1], [0], [0], [1], [0, 0, 1, 1], [], []>} : vector<8x128xf32>, vector<128x32xf32>, vector<8x32xf32> -> vector<8x32xf32>
    %c0_30 = arith.constant 0 : index
    %c0_31 = arith.constant 0 : index
    %43 = vector.load %arg10[%c0_30, %c0_31] : memref<8x32xf32, #tpu.memory_space<vmem>>, vector<8x32xf32>
    tpu.vector_store %arg10[%c0_30, %c0_31], %42 {strides = array<i32>} : memref<8x32xf32, #tpu.memory_space<vmem>>, vector<8x32xf32>,
    return
  }
  func.func @transform_0(%arg0: i32) -> (i32, i32) {
    %c0_i32 = arith.constant 0 : i32
    %c0_i32_0 = arith.constant 0 : i32
    return %arg0, %c0_i32 : i32, i32
  }
  func.func @transform_1(%arg0: i32) -> (i32, i32) {
    %c0_i32 = arith.constant 0 : i32
    %c0_i32_0 = arith.constant 0 : i32
    return %arg0, %c0_i32 : i32, i32
  }
  func.func @transform_2(%arg0: i32) -> (i32, i32) {
    %c0_i32 = arith.constant 0 : i32
    %c0_i32_0 = arith.constant 0 : i32
    %c0_i32_1 = arith.constant 0 : i32
    return %c0_i32, %c0_i32_0 : i32, i32
  }
  func.func @transform_3(%arg0: i32) -> (i32, i32) {
    %c0_i32 = arith.constant 0 : i32
    %c0_i32_0 = arith.constant 0 : i32
    %c0_i32_1 = arith.constant 0 : i32
    return %c0_i32, %c0_i32_0 : i32, i32
  }
  func.func @transform_4(%arg0: i32) -> (i32, i32) {
    %c0_i32 = arith.constant 0 : i32
    %c0_i32_0 = arith.constant 0 : i32
    %c0_i32_1 = arith.constant 0 : i32
    return %c0_i32, %c0_i32_0 : i32, i32
  }
  func.func @transform_5(%arg0: i32) -> (i32, i32) {
    %c0_i32 = arith.constant 0 : i32
    %c0_i32_0 = arith.constant 0 : i32
    %c0_i32_1 = arith.constant 0 : i32
    return %c0_i32, %c0_i32_0 : i32, i32
  }
  func.func @transform_6(%arg0: i32) -> (i32, i32) {
    %c0_i32 = arith.constant 0 : i32
    %c0_i32_0 = arith.constant 0 : i32
    %c0_i32_1 = arith.constant 0 : i32
    return %c0_i32, %c0_i32_0 : i32, i32
  }
  func.func @transform_7(%arg0: i32) -> (i32, i32) {
    %c0_i32 = arith.constant 0 : i32
    %c0_i32_0 = arith.constant 0 : i32
    %c0_i32_1 = arith.constant 0 : i32
    return %c0_i32, %c0_i32_0 : i32, i32
  }
  func.func @transform_8(%arg0: i32) -> (i32, i32) {
    %c0_i32 = arith.constant 0 : i32
    %c0_i32_0 = arith.constant 0 : i32
    %c0_i32_1 = arith.constant 0 : i32
    return %c0_i32, %c0_i32_0 : i32, i32
  }
  func.func @transform_9(%arg0: i32) -> (i32, i32) {
    %c0_i32 = arith.constant 0 : i32
    %c0_i32_0 = arith.constant 0 : i32
    return %arg0, %c0_i32 : i32, i32
  }
  func.func @transform_10(%arg0: i32) -> (i32, i32) {
    %c0_i32 = arith.constant 0 : i32
    %c0_i32_0 = arith.constant 0 : i32
    return %arg0, %c0_i32 : i32, i32
  }
}

</mosaic_0001>

<bundles_post_ra>
// kernel: tpu_custom_call.1
= control target key start
LH: loop header
LB: loop body
LE: loop exit
PB: predicated region body
PF: predicated region fallthrough
CT: control target
= control target key end

     0   :  { %s2234_s0 = inlined_call_operand.vmem [shape: f32[256,32], index: 0, kind: input, shape index: {}]   ;;  %s2235_s1 = inlined_call_operand.vmem [shape: f32[16,16], index: 1, kind: input, shape index: {}]   ;;  %s2236_s2 = inlined_call_operand.vmem [shape: f32[32,32], index: 2, kind: input, shape index: {}]   ;;  %s2237_s3 = inlined_call_operand.vmem [shape: f32[16,32], index: 3, kind: input, shape index: {}]   ;;  %s2238_s4 = inlined_call_operand.vmem [shape: f32[1,32], index: 4, kind: input, shape index: {}]   ;;  %s2239_s5 = inlined_call_operand.vmem [shape: f32[1,32], index: 5, kind: input, shape index: {}]   ;;  %s2240_s6 = inlined_call_operand.vmem [shape: f32[128,8], index: 6, kind: input, shape index: {}]   ;;  %s2241_s7 = inlined_call_operand.vmem [shape: f32[128,16], index: 7, kind: input, shape index: {}]   ;;  %s2242_s8 = inlined_call_operand.vmem [shape: f32[8,128], index: 8, kind: input, shape index: {}]   ;;  %s2243_s9 = inlined_call_operand.hbm [shape: f32[16,32], index: 9, kind: output, shape index: {0}]   ;;  %s2244_s10 = inlined_call_operand.hbm [shape: f32[16,16], index: 10, kind: output, shape index: {1}]  }
   0x1   :  { %2247 = sst [smem:[#allocation8_spill]] %s2234_s0 }
   0x2   :  { %2248 = sst [smem:[#allocation9_spill]] %s2235_s1 }
   0x3   :  { %2249 = sst [smem:[#allocation10_spill]] %s2236_s2 }
   0x4   :  { %16 = vsyncpa [#allocation3], 0 }
   0x5   :  { %18 = vsyncpa [#allocation3 + $0x1], 0 }
   0x6   :  { %19 = vsyncpa [#allocation5], 0 }
   0x7   :  { %21 = vsyncpa [#allocation5 + $0x1], 0  ;;  %s1817_s13 = smov 0   ;;  %s1819_s14 = smov 0  }
   0x8   :  { %s1821_s15 = smov 0   ;;  %s1823_s16 = smov 0  }
   0x9 LB: > { %s1838_s17 = sadd.s32 4294967295, %s1749_s16   ;;  %s1343_s18 = sadd.s32 4294967294, %s1749_s16   ;;  %s1749_s16 = sphi %s1823_s16, %s2260_s16   ;;  %s1745_s15 = sphi %s1821_s15, %s2259_s15   ;;  %s1741_s14 = sphi %s1819_s14, %s2258_s14   ;;  %s1737_s13 = sphi %s1817_s13, %s2257_s13  }
   0xa   : > { %s1842_s19 = sadd.s32 1, %s1749_s16   ;;  %s233_s20 = sadd.s32 1, %s1745_s15 }
   0xb   : > { %s230_s21 = ssub.s32 %s1749_s16, %s1842_s19  ;;  %p243_p0 = scmp.ne.s32.totalorder %s1745_s15, %s1741_s14 }
   0xc   : > { %p231_p1 = scmp.eq.s32.totalorder %s230_s21, 0  ;;  %p244_p2 = scmp.eq.s32.totalorder %s1838_s17, 1 }
   0xd   : > { %p249_p3 = scmp.ne.s32.totalorder %s1741_s14, %s1737_s13  ;;  %p250_p4 = scmp.eq.s32.totalorder %s1343_s18, 1 }
   0xe   : > { %s1853_s22 = scalar_select %p231_p1, %s1745_s15, %s233_s20  }
   0xf   : > { %p1855_p5 = por %p244_p2, %p243_p0  ;;  %p1859_p6 = por %p250_p4, %p249_p3 }
  0x10   : > { %p1346_p7 = scmp.ge.s32.totalorder %s1749_s16, 1  ;;  %p331_p8 = scmp.lt.s32.totalorder %s1749_s16, 3 }
  0x12   : > { %p332_p9 = pnand %p1346_p7, %p331_p8 }
  0x13   : > { %p384_p10 = scmp.lt.s32.totalorder (!%p332_p9), %s1838_s17, 1  ;;  %s2252_s2 = sld [smem:[#allocation10_spill]] (!%p332_p9) }
  0x14   : > { %335 = sbr.rel (%p332_p9) target bundleno = 1477 (0x5c5), region = 56  ;;  %s2253_s1 = sld [smem:[#allocation9_spill]] (!%p332_p9) }
  0x15   : > { %s1349_s27 = sshll.u32 (!%p332_p9), %s1838_s17, 4  ;;  %s2254_s0 = sld [smem:[#allocation8_spill]] (!%p332_p9) }
  0x16   : > { %p379_p11 = scmp.lt.s32.totalorder (!%p332_p9), %s1349_s27, 31  ;;  %s2153_s29 = sand.u32 (!%p332_p9), 1, %s1741_s14  }
  0x17   : > { %s1753_s11 = smov (!%p332_p9), 32   ;;  %s1754_s12 = smov (!%p332_p9), 16  }
  0x18   : > { %s1757_s25 = smov (!%p332_p9), 64   ;;  %s2246_s28 = sshll.u32 (!%p332_p9), %s1838_s17, 7 }
  0x19   : > { %v410_v0 = vld [vmem:[%s2237_s3 + $0x8] sm:$0xff]  ;;  %v1751_v1 = vmov 0.0   ;;  %v409_v2 = vld [vmem:[%s2237_s3] sm:$0xff]  ;;  %vm1752_vm0 = vmmov 0   ;;  %v408_v3 = vld [vmem:[%s2252_s2 + $0x18] sm:$0xff]  ;;  %s385_s18 = scalar_select %p384_p10, %s1838_s17, 1 }
  0x1a   : > { %1467 = vmatprep.subr.mxu1 %v1751_v1  ;;  %1471 = vmatprep.mubr.msk.f32.mxu1 %vm1752_vm0, %v1751_v1  ;;  %v407_v4 = vld [vmem:[%s2252_s2 + $0x10] sm:$0xff]  ;;  %vm418_vm1 = vcmask 130048   ;;  %s2262_s27 = smov (!%p379_p11, %s1349_s27), 31  ;;  %v406_v6 = vld [vmem:[%s2252_s2 + $0x8] sm:$0xff]  ;;  %v405_v7 = vld [vmem:[%s2252_s2] sm:$0xff]  ;;  %vm702_vm2 = vcmask 261120  }
  0x1b   : > { %1468 = vmatpush3.msra.mxu1 %v410_v0  ;;  %1500 = vmatprep.subr.mxu0 %v408_v3  ;;  %s1351_s20 = sshll.u32 %s385_s18, 3  ;;  %s1350_s30 = sshll.u32 %s2262_s27, 3  ;;  %v492_v10 = vld [vmem:[%s2240_s6] sm:$0xff]  ;;  %vm508_vm3 = vcmask 64512   ;;  %v493_v29 = vld [vmem:[%s2240_s6 + $0x8] sm:$0xff]  ;;  %v494_v30 = vld [vmem:[%s2240_s6 + $0x10] sm:$0xff] }
  0x1c   : > { %1469 = vmatprep.subr.mxu1 %v1751_v1  ;;  %1501 = vmatpush3.msra.mxu0 %v408_v3  ;;  %s387_s26 = scalar_lea.vmem %s2253_s1, %s1351_s20  ;;  %s1897_s21 = scalar_lea.vmem %s2254_s0, %s1350_s30  ;;  %v1352_v25 = vld [vmem:[%s2238_s4] ss:$0 sm:$0xff]  ;;  %v495_v31 = vld [vmem:[%s2240_s6 + $0x18] sm:$0xff]  ;;  %v497_v33 = vld [vmem:[%s2240_s6 + $0x28] sm:$0xff]  ;;  %vm1125_vm4 = vcmask 392192   ;;  %vm1127_vm5 = vcmask 523264  }
  0x1d   : > { %1470 = vmatpush3.msra.mxu1 %v409_v2  ;;  %1502 = vmatprep.subr.mxu0 %v407_v4  ;;  %v404_v5 = vld [vmem:[%s387_s26] sm:$0xff]  ;;  %v389_v9 = vld [vmem:[%s1897_s21 + $0x8] sm:$0xff]  ;;  %v390_v11 = vld [vmem:[%s1897_s21 + $0x10] sm:$0xff]  ;;  %s2245_s30 = sshll.u32 %s2153_s29, 3  ;;  %s1755_s20 = smov 48   ;;  %vm1129_vm6 = vcmask 654336  }
  0x1e   : > { %1503 = vmatpush3.msra.mxu0 %v407_v4  ;;  %1472 = vmatmul.mubr.msk.f32.vlgmr.msra.gmra.mxu1 %vm418_vm1, %v404_v5  ;;  %v1900_v8 = vld [vmem:[%s1897_s21] sm:$0xff]  ;;  %v391_v12 = vld [vmem:[%s1897_s21 + $0x18] sm:$0xff]  ;;  %v393_v14 = vld [vmem:[%s1897_s21 + $0x28] sm:$0xff]  ;;  %s2158_s18 = scalar_lea.vmem [#allocation4], %s2245_s30  ;;  %s1758_s26 = smov 112   ;;  %vm1131_vm7 = vcmask 785408  }
  0x1f   : > { %1504 = vmatprep.subr.mxu0 %v406_v6  ;;  %1508 = vmatprep.mubr.msk.f32.mxu0 %vm702_vm2, %v1900_v8  ;;  %v392_v13 = vld [vmem:[%s1897_s21 + $0x20] sm:$0xff]  ;;  %v394_v15 = vld [vmem:[%s1897_s21 + $0x30] sm:$0xff]  ;;  %v395_v16 = vld [vmem:[%s1897_s21 + $0x38] sm:$0xff]  ;;  %s1759_s27 = smov 96   ;;  %vm1133_vm8 = vcmask 916480  }
  0x20   : > { %1505 = vmatpush3.msra.mxu0 %v406_v6  ;;  %1476 = vmatprep.mubr.msk.f32.mxu1 %vm508_vm3, %v492_v10  ;;  %v396_v17 = vld [vmem:[%s1897_s21 + $0x40] sm:$0xff]  ;;  %v397_v18 = vld [vmem:[%s1897_s21 + $0x48] sm:$0xff]  ;;  %v398_v19 = vld [vmem:[%s1897_s21 + $0x50] sm:$0xff] }
  0x21   : > { %1506 = vmatprep.subr.mxu0 %v405_v7  ;;  %v399_v20 = vld [vmem:[%s1897_s21 + $0x58] sm:$0xff]  ;;  %v400_v21 = vld [vmem:[%s1897_s21 + $0x60] sm:$0xff]  ;;  %v401_v22 = vld [vmem:[%s1897_s21 + $0x68] sm:$0xff] }
  0x22   : > { %1507 = vmatpush3.msra.mxu0 %v405_v7  ;;  %v402_v23 = vld [vmem:[%s1897_s21 + $0x70] sm:$0xff]  ;;  %v403_v24 = vld [vmem:[%s1897_s21 + $0x78] sm:$0xff]  ;;  %v496_v32 = vld [vmem:[%s2240_s6 + $0x20] sm:$0xff]  ;;  %s1756_s21 = smov 80  }
  0x23   : > { %1509 = vmatmul.mubr.msk.f32.vlgmr.msra.gmra.mxu0 %vm702_vm2, %v389_v9  ;;  %1567 = vmatprep.subr.mxu0 %v1751_v1  ;;  %v498_v34 = vld [vmem:[%s2240_s6 + $0x30] sm:$0xff]  ;;  %v499_v35 = vld [vmem:[%s2240_s6 + $0x38] sm:$0xff]  ;;  %v500_v36 = vld [vmem:[%s2240_s6 + $0x40] sm:$0xff] }
  0x24   : > { %1511 = vmatprep.mubr.msk.f32.mxu0 %vm702_vm2, %v390_v11  ;;  %1568 = vmatpush3.msra.mxu0 %v403_v24  ;;  %v501_v37 = vld [vmem:[%s2240_s6 + $0x48] sm:$0xff]  ;;  %v502_v38 = vld [vmem:[%s2240_s6 + $0x50] sm:$0xff]  ;;  %v503_v39 = vld [vmem:[%s2240_s6 + $0x58] sm:$0xff] }
  0x25   : > { %1569 = vmatprep.subr.mxu0 %v1751_v1  ;;  %v504_v40 = vld [vmem:[%s2240_s6 + $0x60] sm:$0xff]  ;;  %v505_v41 = vld [vmem:[%s2240_s6 + $0x68] sm:$0xff]  ;;  %v506_v42 = vld [vmem:[%s2240_s6 + $0x70] sm:$0xff] }
  0x26   : > { %1570 = vmatpush3.msra.mxu0 %v402_v23  ;;  %v507_v43 = vld [vmem:[%s2240_s6 + $0x78] sm:$0xff] }
  0x27   : > { %1512 = vmatmul.mubr.msk.f32.gmra.mxu0 %vm702_vm2, %v391_v12  ;;  %1571 = vmatprep.subr.mxu0 %v1751_v1 }
  0x28   : > { %1514 = vmatprep.mubr.msk.f32.mxu0 %vm702_vm2, %v392_v13  ;;  %1572 = vmatpush3.msra.mxu0 %v401_v22 }
  0x29   : > { %1573 = vmatprep.subr.mxu0 %v1751_v1 }
  0x2a   : > { %1574 = vmatpush3.msra.mxu0 %v400_v21 }
  0x2b   : > { %1515 = vmatmul.mubr.msk.f32.gmra.mxu0 %vm702_vm2, %v393_v14  ;;  %1575 = vmatprep.subr.mxu0 %v1751_v1 }
  0x2c   : > { %1517 = vmatprep.mubr.msk.f32.mxu0 %vm702_vm2, %v394_v15  ;;  %1576 = vmatpush3.msra.mxu0 %v399_v20 }
  0x2d   : > { %1577 = vmatprep.subr.mxu0 %v1751_v1 }
  0x2e   : > { %1578 = vmatpush3.msra.mxu0 %v398_v19 }
  0x2f   : > { %1518 = vmatmul.mubr.msk.f32.gmra.mxu0 %vm702_vm2, %v395_v16  ;;  %1579 = vmatprep.subr.mxu0 %v1751_v1 }
  0x30   : > { %1520 = vmatprep.mubr.msk.f32.mxu0 %vm702_vm2, %v396_v17  ;;  %1580 = vmatpush3.msra.mxu0 %v397_v18 }
  0x31   : > { %1581 = vmatprep.subr.mxu0 %v1751_v1 }
  0x32   : > { %1582 = vmatpush3.msra.mxu0 %v396_v17 }
  0x33   : > { %1521 = vmatmul.mubr.msk.f32.gmra.mxu0 %vm702_vm2, %v397_v18  ;;  %1583 = vmatprep.subr.mxu0 %v1751_v1 }
  0x34   : > { %1523 = vmatprep.mubr.msk.f32.mxu0 %vm702_vm2, %v398_v19  ;;  %1584 = vmatpush3.msra.mxu0 %v395_v16 }
  0x35   : > { %1585 = vmatprep.subr.mxu0 %v1751_v1 }
  0x36   : > { %1586 = vmatpush3.msra.mxu0 %v394_v15  ;;  %v2042_v15 = vld [vmem:[%s2239_s5] ss:$0 sm:$0xff] }
  0x37   : > { %1524 = vmatmul.mubr.msk.f32.gmra.mxu0 %vm702_vm2, %v399_v20  ;;  %1587 = vmatprep.subr.mxu0 %v1751_v1 }
  0x38   : > { %1526 = vmatprep.mubr.msk.f32.mxu0 %vm702_vm2, %v400_v21  ;;  %1588 = vmatpush3.msra.mxu0 %v393_v14 }
  0x39   : > { %1589 = vmatprep.subr.mxu0 %v1751_v1 }
  0x3a   : > { %1590 = vmatpush3.msra.mxu0 %v392_v13 }
  0x3b   : > { %1527 = vmatmul.mubr.msk.f32.gmra.mxu0 %vm702_vm2, %v401_v22  ;;  %1591 = vmatprep.subr.mxu0 %v1751_v1 }
  0x3c   : > { %1529 = vmatprep.mubr.msk.f32.mxu0 %vm702_vm2, %v402_v23  ;;  %1592 = vmatpush3.msra.mxu0 %v391_v12 }
  0x3d   : > { %1593 = vmatprep.subr.mxu0 %v1751_v1 }
  0x3e   : > { %1594 = vmatpush3.msra.mxu0 %v390_v11 }
  0x3f   : > { %1530 = vmatmul.mubr.msk.f32.gmra.mxu0 %vm702_vm2, %v403_v24  ;;  %1595 = vmatprep.subr.mxu0 %v1751_v1 }
  0x40   : > { %1599 = vmatprep.mubr.msk.f32.mxu0 %vm1752_vm0, %v1751_v1  ;;  %1596 = vmatpush3.msra.mxu0 %v389_v9 }
  0x41   : > { %1597 = vmatprep.subr.mxu0 %v1751_v1 }
  0x42   : > { %1598 = vmatpush3.msra.mxu0 %v1900_v8 }
  0xde   : > { %v488_v26 = vpop.f32.mrf.mxu1 }
  0xdf   : > { %v489_v27 = vadd.f32 %v1352_v25, %v488_v26 }
  0xe0   : > { %v1473_v28 = vpop.f32.mrf.mxu1 }
  0xe1   : > { %1474 = vmatprep.subr.mxu1 %v489_v27 }
  0xe2   : > { %1475 = vmatpush3.msra.mxu1 %v489_v27 }
  0xe3   : > { %1477 = vmatmul.mubr.msk.f32.vlgmr.msra.gmra.mxu1 %vm508_vm3, %v493_v29  ;;  %1532 = vmatprep.subr.mxu1 %v1751_v1  ;;  %v2023_v44 = vpop.f32.mrf.mxu0 }
  0xe4   : > { %1479 = vmatprep.mubr.msk.f32.mxu1 %vm508_vm3, %v494_v30 }
  0xe5   : > { %v2025_v45 = vpop.f32.mrf.mxu0 }
  0xe7   : > { %1480 = vmatmul.mubr.msk.f32.gmra.mxu1 %vm508_vm3, %v495_v31  ;;  %v2027_v46 = vpop.f32.mrf.mxu0 }
  0xe8   : > { %1482 = vmatprep.mubr.msk.f32.mxu1 %vm508_vm3, %v496_v32 }
  0xe9   : > { %v2029_v47 = vpop.f32.mrf.mxu0 }
  0xeb   : > { %1483 = vmatmul.mubr.msk.f32.gmra.mxu1 %vm508_vm3, %v497_v33  ;;  %v2031_v48 = vpop.f32.mrf.mxu0 }
  0xec   : > { %1485 = vmatprep.mubr.msk.f32.mxu1 %vm508_vm3, %v498_v34 }
  0xed   : > { %v837_v49 = vpop.f32.mrf.mxu0 }
  0xef   : > { %1486 = vmatmul.mubr.msk.f32.gmra.mxu1 %vm508_vm3, %v499_v35  ;;  %v1519_v50 = vpop.f32.mrf.mxu0 }
  0xf0   : > { %1488 = vmatprep.mubr.msk.f32.mxu1 %vm508_vm3, %v500_v36 }
  0xf1   : > { %v847_v51 = vpop.f32.mrf.mxu0 }
  0xf3   : > { %1489 = vmatmul.mubr.msk.f32.gmra.mxu1 %vm508_vm3, %v501_v37  ;;  %v1522_v54 = vpop.f32.mrf.mxu0 }
  0xf4   : > { %1491 = vmatprep.mubr.msk.f32.mxu1 %vm508_vm3, %v502_v38 }
  0xf5   : > { %v857_v57 = vpop.f32.mrf.mxu0 }
  0xf7   : > { %1492 = vmatmul.mubr.msk.f32.gmra.mxu1 %vm508_vm3, %v503_v39  ;;  %v1525_v60 = vpop.f32.mrf.mxu0 }
  0xf8   : > { %1494 = vmatprep.mubr.msk.f32.mxu1 %vm508_vm3, %v504_v40 }
  0xf9   : > { %v867_v63 = vpop.f32.mrf.mxu0 }
  0xfb   : > { %1495 = vmatmul.mubr.msk.f32.gmra.mxu1 %vm508_vm3, %v505_v41  ;;  %v1528_v3 = vpop.f32.mrf.mxu0 }
  0xfc   : > { %1497 = vmatprep.mubr.msk.f32.mxu1 %vm508_vm3, %v506_v42 }
  0xfd   : > { %v877_v6 = vpop.f32.mrf.mxu0 }
  0xff   : > { %1498 = vmatmul.mubr.msk.f32.gmra.mxu1 %vm508_vm3, %v507_v43  ;;  %v1531_v11 = vpop.f32.mrf.mxu0 }
 0x100   : > { %1564 = vmatprep.mubr.msk.f32.mxu1 %vm1752_vm0, %v1751_v1 }
 0x101   : > { %v887_v23 = vpop.f32.mrf.mxu0 }
 0x1a3   : > { %v2033_v52 = vpop.f32.mrf.mxu1 }
 0x1a5   : > { %v2035_v53 = vpop.f32.mrf.mxu1 }
 0x1a7   : > { %v2037_v55 = vpop.f32.mrf.mxu1 }
 0x1a9   : > { %v633_v56 = vpop.f32.mrf.mxu1 }
 0x1ab   : > { %v1484_v58 = vpop.f32.mrf.mxu1 }
 0x1ad   : > { %v643_v59 = vpop.f32.mrf.mxu1 }
 0x1ae   : > { %v838_v38 = vadd.f32 %v837_v49, %v643_v59 }
 0x1af   : > { %v1487_v61 = vpop.f32.mrf.mxu1 }
 0x1b0   : > { %v853_v39 = vadd.f32 %v1519_v50, %v1487_v61 }
 0x1b1   : > { %v653_v62 = vpop.f32.mrf.mxu1 }
 0x1b2   : > { %v848_v30 = vadd.f32 %v847_v51, %v653_v62  ;;  %v900_v62 = vmax.f32 %v838_v38, 0.0 }
 0x1b3   : > { %v1490_v0 = vpop.f32.mrf.mxu1 }
 0x1b4   : > { %v863_v31 = vadd.f32 %v1522_v54, %v1490_v0  ;;  %v902_v40 = vmax.f32 %v848_v30, 0.0  ;;  %v818_v0 = vadd.f32 %v2025_v45, %v2035_v53 }
 0x1b5   : > { %v663_v2 = vpop.f32.mrf.mxu1 }
 0x1b6   : > { %v858_v19 = vadd.f32 %v857_v57, %v663_v2  ;;  %v905_v41 = vmax.f32 %v863_v31, 0.0  ;;  %v828_v57 = vadd.f32 %v2029_v47, %v633_v56  ;;  %v925_v61 = vmul.f32 %v2042_v15, %v902_v40  ;;  %v994_v31 = vld [vmem:[%s2241_s7 + $0x50] sm:$0xff] }
 0x1b7   : > { %v1493_v4 = vpop.f32.mrf.mxu1  ;;  %v833_v47 = vadd.f32 %v2027_v46, %v2037_v55 }
 0x1b8   : > { %v873_v20 = vadd.f32 %v1525_v60, %v1493_v4  ;;  %v904_v32 = vmax.f32 %v858_v19, 0.0  ;;  %v843_v60 = vadd.f32 %v2031_v48, %v1484_v58  ;;  %v928_v59 = vmul.f32 %v2042_v15, %v905_v41 }
 0x1b9   : > { %v673_v5 = vpop.f32.mrf.mxu1  ;;  %v898_v56 = vmax.f32 %v828_v57, 0.0  ;;  %v953_v2 = vsel %vm702_vm2, %v925_v61, 0.0  ;;  %v923_v4 = vmul.f32 %v2042_v15, %v900_v62  ;;  %v899_v45 = vmax.f32 %v833_v47, 0.0  ;;  %v988_v62 = vld [vmem:[%s2241_s7 + $0x20] sm:$0xff] }
 0x1ba   : > { %v868_v9 = vadd.f32 %v867_v63, %v673_v5  ;;  %v907_v33 = vmax.f32 %v873_v20, 0.0  ;;  %v927_v54 = vmul.f32 %v2042_v15, %v904_v32  ;;  %v903_v63 = vmax.f32 %v853_v39, 0.0  ;;  %v991_v39 = vld [vmem:[%s2241_s7 + $0x38] sm:$0xff] }
 0x1bb   : > { %v1496_v7 = vpop.f32.mrf.mxu1  ;;  %v901_v48 = vmax.f32 %v843_v60, 0.0  ;;  %v962_v58 = vsel %vm702_vm2, %v928_v59, 0.0  ;;  %v823_v5 = vadd.f32 %v2023_v44, %v2033_v52  ;;  %v947_v46 = vsel %vm702_vm2, %v923_v4, 0.0 }
 0x1bc   : > { %v883_v8 = vadd.f32 %v1528_v3, %v1496_v7  ;;  %v906_v21 = vmax.f32 %v868_v9, 0.0  ;;  %v930_v51 = vmul.f32 %v2042_v15, %v907_v33  ;;  %v959_v50 = vsel %vm702_vm2, %v927_v54, 0.0  ;;  %v993_v33 = vld [vmem:[%s2241_s7 + $0x48] sm:$0xff] }
 0x1bd   : > { %v683_v10 = vpop.f32.mrf.mxu1  ;;  %v926_v3 = vmul.f32 %v2042_v15, %v903_v63  ;;  %v924_v55 = vmul.f32 %v2042_v15, %v901_v48  ;;  %v921_v7 = vmul.f32 %v2042_v15, %v898_v56  ;;  %v989_v54 = vld [vmem:[%s2241_s7 + $0x28] sm:$0xff] }
 0x1be   : > { %v909_v12 = vmax.f32 %v883_v8, 0.0  ;;  %v878_v13 = vadd.f32 %v877_v6, %v683_v10  ;;  %v929_v37 = vmul.f32 %v2042_v15, %v906_v21  ;;  %v968_v49 = vsel %vm702_vm2, %v930_v51, 0.0  ;;  %v998_v21 = vld [vmem:[%s2241_s7 + $0x70] sm:$0xff]  ;;  %v985_v56 = vld [vmem:[%s2241_s7 + $0x8] sm:$0xff] }
 0x1bf   : > { %v1499_v14 = vpop.f32.mrf.mxu1  ;;  %v896_v6 = vmax.f32 %v818_v0, 0.0  ;;  %v956_v53 = vsel %vm702_vm2, %v926_v3, 0.0  ;;  %v897_v8 = vmax.f32 %v823_v5, 0.0  ;;  %v950_v9 = vsel %vm702_vm2, %v924_v55, 0.0  ;;  %v986_v0 = vld [vmem:[%s2241_s7 + $0x10] sm:$0xff] }
 0x1c0   : > { %v908_v16 = vmax.f32 %v878_v13, 0.0  ;;  %v893_v17 = vadd.f32 %v1531_v11, %v1499_v14  ;;  %v932_v18 = vmul.f32 %v2042_v15, %v909_v12  ;;  %v965_v43 = vsel %vm702_vm2, %v929_v37, 0.0  ;;  %v992_v37 = vld [vmem:[%s2241_s7 + $0x40] sm:$0xff] }
 0x1c1   : > { %v693_v22 = vpop.f32.mrf.mxu1  ;;  %v941_v10 = vsel %vm702_vm2, %v921_v7, 0.0  ;;  %v922_v11 = vmul.f32 %v2042_v15, %v899_v45  ;;  %v919_v44 = vmul.f32 %v2042_v15, %v896_v6  ;;  %v920_v13 = vmul.f32 %v2042_v15, %v897_v8  ;;  %v983_v6 = vld [vmem:[%s2242_s8] sm:$0xff] }
 0x1c2   : > { %v911_v24 = vmax.f32 %v893_v17, 0.0  ;;  %v888_v25 = vadd.f32 %v887_v23, %v693_v22  ;;  %v974_v26 = vsel %vm702_vm2, %v932_v18, 0.0  ;;  %v931_v27 = vmul.f32 %v2042_v15, %v908_v16  ;;  %v999_v17 = vld [vmem:[%s2241_s7 + $0x78] sm:$0xff] }
 0x1c3   : > { %975 = vadd.xlane.f32.xlu1 %v974_v26  ;;  %v944_v52 = vsel %vm702_vm2, %v922_v11, 0.0  ;;  %v935_v12 = vsel %vm702_vm2, %v919_v44, 0.0  ;;  %v938_v14 = vsel %vm702_vm2, %v920_v13, 0.0 }
 0x1c4   : > { %v910_v28 = vmax.f32 %v888_v25, 0.0  ;;  %v934_v29 = vmul.f32 %v2042_v15, %v911_v24  ;;  %v971_v35 = vsel %vm702_vm2, %v931_v27, 0.0  ;;  %v996_v25 = vld [vmem:[%s2241_s7 + $0x60] sm:$0xff]  ;;  %v995_v27 = vld [vmem:[%s2241_s7 + $0x58] sm:$0xff] }
 0x1c6   : > { %v980_v34 = vsel %vm702_vm2, %v934_v29, 0.0  ;;  %v933_v36 = vmul.f32 %v2042_v15, %v910_v28  ;;  %v997_v15 = vld [vmem:[%s2241_s7 + $0x68] sm:$0xff] }
 0x1c7   : > { %981 = vadd.xlane.f32.xlu0 %v980_v34  ;;  %972 = vadd.xlane.f32.xlu1 %v971_v35 }
 0x1c8   : > { %v977_v42 = vsel %vm702_vm2, %v933_v36, 0.0 }
 0x1cb   : > { %978 = vadd.xlane.f32.xlu0 %v977_v42  ;;  %966 = vadd.xlane.f32.xlu1 %v965_v43  ;;  %v990_v42 = vld [vmem:[%s2241_s7 + $0x30] sm:$0xff] }
 0x1cf   : > { %969 = vadd.xlane.f32.xlu0 %v968_v49  ;;  %960 = vadd.xlane.f32.xlu1 %v959_v50  ;;  %v987_v50 = vld [vmem:[%s2241_s7 + $0x18] sm:$0xff] }
 0x1d3   : > { %963 = vadd.xlane.f32.xlu0 %v962_v58  ;;  %954 = vadd.xlane.f32.xlu1 %v953_v2  ;;  %v984_v2 = vld [vmem:[%s2241_s7] sm:$0xff] }
 0x1d7   : > { %957 = vadd.xlane.f32.xlu0 %v956_v53  ;;  %948 = vadd.xlane.f32.xlu1 %v947_v46 }
 0x1db   : > { %951 = vadd.xlane.f32.xlu0 %v950_v9  ;;  %942 = vadd.xlane.f32.xlu1 %v941_v10 }
 0x1df   : > { %945 = vadd.xlane.f32.xlu0 %v944_v52  ;;  %936 = vadd.xlane.f32.xlu1 %v935_v12 }
 0x1e3   : > { %939 = vadd.xlane.f32.xlu0 %v938_v14 }
 0x24c   : > { %v976_v16 = vpop.xlane.xlu1 %975 }
 0x24d   : > { %v1013_v26 = vmul.f32 %v997_v15, %v976_v16 }
 0x250   : > { %v982_v18 = vpop.xlane.xlu0 %981  ;;  %v973_v19 = vpop.xlane.xlu1 %972 }
 0x251   : > { %v1015_v20 = vmul.f32 %v999_v17, %v982_v18  ;;  %v1012_v30 = vmul.f32 %v996_v25, %v973_v19 }
 0x253   : > { %1533 = vmatpush3.msra.mxu1 %v1015_v20 }
 0x254   : > { %v979_v22 = vpop.xlane.xlu0 %978  ;;  %v967_v23 = vpop.xlane.xlu1 %966  ;;  %1534 = vmatprep.subr.mxu1 %v1751_v1 }
 0x255   : > { %v1014_v24 = vmul.f32 %v998_v21, %v979_v22  ;;  %v1010_v36 = vmul.f32 %v994_v31, %v967_v23 }
 0x257   : > { %1535 = vmatpush3.msra.mxu1 %v1014_v24 }
 0x258   : > { %1536 = vmatprep.subr.mxu1 %v1751_v1  ;;  %v970_v28 = vpop.xlane.xlu0 %969  ;;  %v961_v29 = vpop.xlane.xlu1 %960 }
 0x259   : > { %1537 = vmatpush3.msra.mxu1 %v1013_v26  ;;  %v1011_v32 = vmul.f32 %v995_v27, %v970_v28  ;;  %v1008_v41 = vmul.f32 %v992_v37, %v961_v29 }
 0x25a   : > { %1538 = vmatprep.subr.mxu1 %v1751_v1 }
 0x25b   : > { %1539 = vmatpush3.msra.mxu1 %v1012_v30 }
 0x25c   : > { %v964_v34 = vpop.xlane.xlu0 %963  ;;  %1540 = vmatprep.subr.mxu1 %v1751_v1  ;;  %v955_v35 = vpop.xlane.xlu1 %954 }
 0x25d   : > { %1541 = vmatpush3.msra.mxu1 %v1011_v32  ;;  %v1009_v38 = vmul.f32 %v993_v33, %v964_v34  ;;  %v1006_v60 = vmul.f32 %v990_v42, %v955_v35 }
 0x25e   : > { %1542 = vmatprep.subr.mxu1 %v1751_v1 }
 0x25f   : > { %1543 = vmatpush3.msra.mxu1 %v1010_v36 }
 0x260   : > { %v958_v40 = vpop.xlane.xlu0 %957  ;;  %1544 = vmatprep.subr.mxu1 %v1751_v1  ;;  %v949_v43 = vpop.xlane.xlu1 %948 }
 0x261   : > { %1545 = vmatpush3.msra.mxu1 %v1009_v38  ;;  %v1007_v51 = vmul.f32 %v991_v39, %v958_v40  ;;  %v1004_v61 = vmul.f32 %v988_v62, %v949_v43 }
 0x262   : > { %1546 = vmatprep.subr.mxu1 %v1751_v1 }
 0x263   : > { %1547 = vmatpush3.msra.mxu1 %v1008_v41 }
 0x264   : > { %v952_v57 = vpop.xlane.xlu0 %951  ;;  %1548 = vmatprep.subr.mxu1 %v1751_v1  ;;  %v943_v49 = vpop.xlane.xlu1 %942 }
 0x265   : > { %1549 = vmatpush3.msra.mxu1 %v1007_v51  ;;  %v1005_v63 = vmul.f32 %v989_v54, %v952_v57  ;;  %v1002_v58 = vmul.f32 %v986_v0, %v943_v49 }
 0x266   : > { %1550 = vmatprep.subr.mxu1 %v1751_v1 }
 0x267   : > { %1551 = vmatpush3.msra.mxu1 %v1006_v60 }
 0x268   : > { %v946_v59 = vpop.xlane.xlu0 %945  ;;  %1552 = vmatprep.subr.mxu1 %v1751_v1  ;;  %v937_v3 = vpop.xlane.xlu1 %936 }
 0x269   : > { %1553 = vmatpush3.msra.mxu1 %v1005_v63  ;;  %v1003_v47 = vmul.f32 %v987_v50, %v946_v59  ;;  %v1000_v5 = vmul.f32 %v984_v2, %v937_v3 }
 0x26a   : > { %1554 = vmatprep.subr.mxu1 %v1751_v1 }
 0x26b   : > { %1555 = vmatpush3.msra.mxu1 %v1004_v61 }
 0x26c   : > { %v940_v48 = vpop.xlane.xlu0 %939  ;;  %1556 = vmatprep.subr.mxu1 %v1751_v1 }
 0x26d   : > { %1557 = vmatpush3.msra.mxu1 %v1003_v47  ;;  %v1001_v4 = vmul.f32 %v985_v56, %v940_v48 }
 0x26e   : > { %1558 = vmatprep.subr.mxu1 %v1751_v1 }
 0x26f   : > { %1559 = vmatpush3.msra.mxu1 %v1002_v58 }
 0x270   : > { %1560 = vmatprep.subr.mxu1 %v1751_v1 }
 0x271   : > { %1561 = vmatpush3.msra.mxu1 %v1001_v4 }
 0x272   : > { %1562 = vmatprep.subr.mxu1 %v1751_v1 }
 0x273   : > { %1563 = vmatpush3.msra.mxu1 %v1000_v5 }
 0x274   : > { %1565 = vmatmul.mubr.f32.vlgmr.msra.gmra.mxu1 %v983_v6 }
 0x334   : > { %v1082_v45 = vpop.f32.mrf.mxu1 }
 0x335   : > { %v1086_v53 = vsel %vm418_vm1, %v1082_v45, -inf }
 0x336   : > { %1087 = vmax.xlane.f32.xlu0 %v1086_v53  ;;  %v1566_v46 = vpop.f32.mrf.mxu1 }
 0x3bf   : > { %v1088_v55 = vpop.xlane.xlu0 %1087 }
 0x3c0   : > { %v1089_v7 = vsub.f32 %v1082_v45, %v1088_v55 }
 0x3c2   : > { %v1090_v8 = vmul.f32 1.442695, %v1089_v7 }
 0x3c4   : > { %1655 = vpow2.f32 %v1090_v8 }
 0x3d1   : > { %v1656_v9 = vpop.eup %1655 }
 0x3d2   : > { %v1092_v10 = vsel %vm418_vm1, %v1656_v9, 0.0 }
 0x3d3   : > { %1093 = vadd.xlane.f32.xlu1 %v1092_v10 }
 0x45c   : > { %v1094_v11 = vpop.xlane.xlu1 %1093 }
 0x45d   : > { %1657 = vrcp.f32 %v1094_v11 }
 0x46a   : > { %v1658_v44 = vpop.eup %1657 }
 0x46b   : > { %v1096_v1 = vmul.f32 %v1658_v44, %v1094_v11 }
 0x46d   : > { %v1097_v52 = vsub.f32 2.0, %v1096_v1 }
 0x46f   : > { %v1098_v12 = vmul.f32 %v1658_v44, %v1097_v52 }
 0x471   : > { %v1099_v13 = vmul.f32 %v1656_v9, %v1098_v12 }
 0x473   : > { %1105 = vrot.lane.b32.xlu1 %v1099_v13, %s1753_s11  ;;  %1102 = vrot.lane.b32.xlu0 %v1099_v13, %s1754_s12  ;;  %1100 = vst.msk [vmem:[%s2158_s18] sm:$0xff] %vm418_vm1, %v1099_v13 }
 0x477   : > { %1108 = vrot.lane.b32.xlu1 %v1099_v13, %s1755_s20  ;;  %1114 = vrot.lane.b32.xlu0 %v1099_v13, %s1756_s21  ;;  %s1238_s20 = scalar_lea.hbm %s2244_s10, %s2246_s28  ;;  %s1240_s21 = sshll.u32 %s2158_s18, 4  ;;  %s1241_s21 = int_to_ptr.vmem [resolvable:$true] %s1240_s21 }
 0x47b   : > { %1111 = vrot.lane.b32.xlu1 %v1099_v13, %s1757_s25  ;;  %1120 = vrot.lane.b32.xlu0 %v1099_v13, %s1758_s26  ;;  %s1214_s25 = scalar_lea.sflag [#allocation5], %s2153_s29  ;;  %s1659_s26 = scalar_lea.vmem %s1241_s21, 128 }
 0x47c   : > { %p1660_p12 = scmp.ne.s32.totalorder %s1241_s21, %s1659_s26 }
 0x47e   : > { %p1661_p13 = pnand %p1660_p12, %p1855_p5 }
 0x47f   : > { %1117 = vrot.lane.b32.xlu1 %v1099_v13, %s1759_s27  ;;  %s1760_s27 = smov [#allocation4]  }
 0x480   : > { %p1662_p0 = pneg %p1661_p13  ;;  %s1663_s30 = sshll.u32 %s1760_s27, 4  ;;  %s1664_s30 = int_to_ptr.vmem [resolvable:$false] %s1663_s30 }
 0x481   : > { %s1665_s0 = scalar_lea.vmem %s1664_s30, 256  ;;  %p1666_p1 = scmp.lt.s32.totalorder %s1241_s21, %s1664_s30 }
 0x482   : > { %p1667_p2 = scmp.lt.s32.totalorder %s1665_s0, %s1659_s26 }
 0x484   : > { %p1668_p3 = por %p1667_p2, %p1666_p1 }
 0x486   : > { %p1669_p4 = pnand %p1668_p3, %p1662_p0 }
 0x4e5   : > { %v1106_v14 = vpop.permute.xlu1 %1105  ;;  %v1103_v16 = vpop.permute.xlu0 %1102 }
 0x4e6   : > { %v1123_v17 = vsel %vm418_vm1, %v1099_v13, %v1103_v16 }
 0x4e7   : > { %v1124_v19 = vsel %vm702_vm2, %v1123_v17, %v1106_v14 }
 0x4e9   : > { %v1109_v18 = vpop.permute.xlu1 %1108  ;;  %v1115_v20 = vpop.permute.xlu0 %1114 }
 0x4ea   : > { %v1126_v21 = vsel %vm1125_vm4, %v1124_v19, %v1109_v18 }
 0x4ed   : > { %v1112_v15 = vpop.permute.xlu1 %1111  ;;  %v1121_v25 = vpop.permute.xlu0 %1120 }
 0x4ee   : > { %v1128_v22 = vsel %vm1127_vm5, %v1126_v21, %v1112_v15 }
 0x4ef   : > { %v1130_v24 = vsel %vm1129_vm6, %v1128_v22, %v1115_v20 }
 0x4f1   : > { %v1118_v23 = vpop.permute.xlu1 %1117 }
 0x4f2   : > { %v1132_v26 = vsel %vm1131_vm7, %v1130_v24, %v1118_v23 }
 0x4f3   : > { %v1134_v27 = vsel %vm1133_vm8, %v1132_v26, %v1121_v25 }
 0x4f4   : > { %v1136_v28 = vmul.f32 %v1134_v27, %v983_v6 }
 0x4f6   : > { %1600 = vmatmul.mubr.f32.vlgmr.msra.gmra.mxu0 %v1136_v28 }
 0x4f7   : > { %1672 = shalt.err (!%p1669_p4)
}
 0x4f8   : > { %s1673_s1 = scalar_lea.hbm %s1238_s20, 128  ;;  %s1677_s12 = scalar_lea.hbm %s2244_s10, 256 }
 0x4f9   : > { %p1674_p7 = scmp.ne.s32.totalorder %s1238_s20, %s1673_s1  ;;  %p1678_p10 = scmp.lt.s32.totalorder %s1238_s20, %s2244_s10 }
 0x4fa   : > { %p1679_p11 = scmp.lt.s32.totalorder %s1677_s12, %s1673_s1 }
 0x4fb   : > { %p1675_p8 = pnand %p1674_p7, %p1855_p5 }
 0x4fc   : > { %p1680_p12 = por %p1679_p11, %p1678_p10 }
 0x4fd   : > { %p1676_p9 = pneg %p1675_p8 }
 0x4ff   : > { %p1681_p13 = pnand %p1680_p12, %p1676_p9 }
 0x501   : > { %1684 = shalt.err (!%p1681_p13)
}
 0x502   : > { %1603 = dma.vmem_to_hbm [thread:$0]  (%p1855_p5), %s1241_s21, 128, %s1238_s20, %s1214_s25  }
 0x503   : > { %s2255_s0 = sshll.u32 %s2153_s29, 3  ;;  %s2256_s27 = sshll.u32 %s1838_s17, 7 }
 0x504   : > { %s370_s30 = scalar_lea.vmem [#allocation2], %s2255_s0  ;;  %s2191_s2 = scalar_lea.hbm %s2243_s9, %s2256_s27 }
 0x505   : > { %s1227_s26 = sshll.u32 %s370_s30, 4  ;;  %s1209_s1 = scalar_lea.sflag [#allocation3], %s2153_s29  ;;  %s2193_s26 = int_to_ptr.vmem [resolvable:$true] %s1227_s26 }
 0x506   : > { %s1685_s28 = scalar_lea.vmem %s2193_s26, 128  ;;  %s1761_s17 = smov [#allocation2]  }
 0x507   : > { %p1686_p0 = scmp.ne.s32.totalorder %s2193_s26, %s1685_s28  ;;  %s1689_s20 = sshll.u32 %s1761_s17, 4  ;;  %s1690_s20 = int_to_ptr.vmem [resolvable:$false] %s1689_s20 }
 0x508   : > { %s1691_s21 = scalar_lea.vmem %s1690_s20, 256  ;;  %p1692_p3 = scmp.lt.s32.totalorder %s2193_s26, %s1690_s20 }
 0x509   : > { %p1687_p1 = pnand %p1686_p0, %p1855_p5  ;;  %p1693_p4 = scmp.lt.s32.totalorder %s1691_s21, %s1685_s28 }
 0x50b   : > { %p1688_p2 = pneg %p1687_p1  ;;  %p1694_p7 = por %p1693_p4, %p1692_p3 }
 0x50d   : > { %p1695_p8 = pnand %p1694_p7, %p1688_p2 }
 0x5b6   : > { %v1203_v29 = vpop.f32.mrf.mxu0 }
 0x5b7   : > { %1207 = vst.msk [vmem:[%s370_s30] sm:$0xff] %vm702_vm2, %v1203_v29 }
 0x5b8   : > { %v1601_v30 = vpop.f32.mrf.mxu0 }
 0x5b9   : > { %1698 = shalt.err (!%p1695_p8)
}
 0x5ba   : > { %s1699_s25 = scalar_lea.hbm %s2191_s2, 128  ;;  %s1703_s0 = scalar_lea.hbm %s2243_s9, 256 }
 0x5bb   : > { %p1700_p9 = scmp.ne.s32.totalorder %s2191_s2, %s1699_s25  ;;  %p1704_p12 = scmp.lt.s32.totalorder %s2191_s2, %s2243_s9 }
 0x5bc   : > { %p1705_p13 = scmp.lt.s32.totalorder %s1703_s0, %s1699_s25 }
 0x5bd   : > { %p1701_p10 = pnand %p1700_p9, %p1855_p5 }
 0x5be   : > { %p1706_p0 = por %p1705_p13, %p1704_p12 }
 0x5bf   : > { %p1702_p11 = pneg %p1701_p10 }
 0x5c1   : > { %p1707_p1 = pnand %p1706_p0, %p1702_p11 }
 0x5c3   : > { %1710 = shalt.err (!%p1707_p1)
}
 0x5c4   : > { %1602 = dma.vmem_to_hbm [thread:$0]  (%p1855_p5), %s2193_s26, 128, %s2191_s2, %s1209_s1  }
 0x5c5 PF: > { %p1613_p2 = scmp.ge.s32.totalorder %s1749_s16, 2  ;;  %s1252_s18 = sand.u32 1, %s1737_s13  }
 0x5c6   : > { %s1253_s11 = scalar_lea.sflag [#allocation3], %s1252_s18 }
 0x5c7   : > { %p1607_p3 = pnand %p1613_p2, %p1859_p6 }
 0x5c9   : > { %p1608_p4 = pneg %p1607_p3 }
 0x5cb   : > { %1728 = dma.done.wait (%p1608_p4), %s1253_s11, 128  }
 0x5cc   : > { %1730 = vsyncadd (%p1608_p4), %s1253_s11, 4294967168  ;;  %s1262_s28 = scalar_lea.sflag [#allocation5], %s1252_s18 }
 0x5cd   : > { %1732 = dma.done.wait (%p1608_p4), %s1262_s28, 128  }
 0x5ce   : > { %1734 = vsyncadd (%p1608_p4), %s1262_s28, 4294967168  ;;  %p24_p5 = scmp.ge.s32.totalorder %s1842_s19, 4   ;;  %s2257_s13 = smov %s1741_s14 }
 0x5cf   : > { %s2258_s14 = smov %s1745_s15  ;;  %s2259_s15 = smov %s1853_s22 }
 0x5d0   : > { %s2260_s16 = smov %s1842_s19  ;;  %26 = sbr.rel (!%p24_p5) target bundleno = 9 (0x9), region = 111 }
 0x5d5   :  { %1267 = vsyncpa [#allocation3], 1 }
 0x5d6   :  { %1269 = vsyncpa [#allocation3 + $0x1], 1 }
 0x5d7   :  { %1270 = vsyncpa [#allocation5], 1 }
 0x5d8   :  { %1272 = vsyncpa [#allocation5 + $0x1], 1 }

// kernel: tpu_custom_call.1
= control target key start
LH: loop header
LB: loop body
LE: loop exit
PB: predicated region body
PF: predicated region fallthrough
CT: control target
= control target key end

     0   :  { %s2234_s0 = inlined_call_operand.vmem [shape: f32[256,32], index: 0, kind: input, shape index: {}]   ;;  %s2235_s1 = inlined_call_operand.vmem [shape: f32[16,16], index: 1, kind: input, shape index: {}]   ;;  %s2236_s2 = inlined_call_operand.vmem [shape: f32[32,32], index: 2, kind: input, shape index: {}]   ;;  %s2237_s3 = inlined_call_operand.vmem [shape: f32[16,32], index: 3, kind: input, shape index: {}]   ;;  %s2238_s4 = inlined_call_operand.vmem [shape: f32[1,32], index: 4, kind: input, shape index: {}]   ;;  %s2239_s5 = inlined_call_operand.vmem [shape: f32[1,32], index: 5, kind: input, shape index: {}]   ;;  %s2240_s6 = inlined_call_operand.vmem [shape: f32[128,8], index: 6, kind: input, shape index: {}]   ;;  %s2241_s7 = inlined_call_operand.vmem [shape: f32[128,16], index: 7, kind: input, shape index: {}]   ;;  %s2242_s8 = inlined_call_operand.vmem [shape: f32[8,128], index: 8, kind: input, shape index: {}]   ;;  %s2243_s9 = inlined_call_operand.hbm [shape: f32[16,32], index: 9, kind: output, shape index: {0}]   ;;  %s2244_s10 = inlined_call_operand.hbm [shape: f32[16,16], index: 10, kind: output, shape index: {1}]  }
   0x1   :  { %2247 = sst [smem:[#allocation8_spill]] %s2234_s0 }
   0x2   :  { %2248 = sst [smem:[#allocation9_spill]] %s2235_s1 }
   0x3   :  { %2249 = sst [smem:[#allocation10_spill]] %s2236_s2 }
   0x4   :  { %16 = vsyncpa [#allocation3], 0 }
   0x5   :  { %18 = vsyncpa [#allocation3 + $0x1], 0 }
   0x6   :  { %19 = vsyncpa [#allocation5], 0 }
   0x7   :  { %21 = vsyncpa [#allocation5 + $0x1], 0  ;;  %s1817_s13 = smov 0   ;;  %s1819_s14 = smov 0  }
   0x8   :  { %s1821_s15 = smov 0   ;;  %s1823_s16 = smov 0  }
   0x9 LB: > { %s1838_s17 = sadd.s32 4294967295, %s1749_s16   ;;  %s1343_s18 = sadd.s32 4294967294, %s1749_s16   ;;  %s1749_s16 = sphi %s1823_s16, %s2260_s16   ;;  %s1745_s15 = sphi %s1821_s15, %s2259_s15   ;;  %s1741_s14 = sphi %s1819_s14, %s2258_s14   ;;  %s1737_s13 = sphi %s1817_s13, %s2257_s13  }
   0xa   : > { %s1842_s19 = sadd.s32 1, %s1749_s16   ;;  %s233_s20 = sadd.s32 1, %s1745_s15 }
   0xb   : > { %s230_s21 = ssub.s32 %s1749_s16, %s1842_s19  ;;  %p243_p0 = scmp.ne.s32.totalorder %s1745_s15, %s1741_s14 }
   0xc   : > { %p231_p1 = scmp.eq.s32.totalorder %s230_s21, 0  ;;  %p244_p2 = scmp.eq.s32.totalorder %s1838_s17, 1 }
   0xd   : > { %p249_p3 = scmp.ne.s32.totalorder %s1741_s14, %s1737_s13  ;;  %p250_p4 = scmp.eq.s32.totalorder %s1343_s18, 1 }
   0xe   : > { %s1853_s22 = scalar_select %p231_p1, %s1745_s15, %s233_s20  }
   0xf   : > { %p1855_p5 = por %p244_p2, %p243_p0  ;;  %p1859_p6 = por %p250_p4, %p249_p3 }
  0x10   : > { %p1346_p7 = scmp.ge.s32.totalorder %s1749_s16, 1  ;;  %p331_p8 = scmp.lt.s32.totalorder %s1749_s16, 3 }
  0x12   : > { %p332_p9 = pnand %p1346_p7, %p331_p8 }
  0x13   : > { %p384_p10 = scmp.lt.s32.totalorder (!%p332_p9), %s1838_s17, 1  ;;  %s2252_s2 = sld [smem:[#allocation10_spill]] (!%p332_p9) }
  0x14   : > { %335 = sbr.rel (%p332_p9) target bundleno = 1477 (0x5c5), region = 56  ;;  %s2253_s1 = sld [smem:[#allocation9_spill]] (!%p332_p9) }
  0x15   : > { %s1349_s27 = sshll.u32 (!%p332_p9), %s1838_s17, 4  ;;  %s2254_s0 = sld [smem:[#allocation8_spill]] (!%p332_p9) }
  0x16   : > { %p379_p11 = scmp.lt.s32.totalorder (!%p332_p9), %s1349_s27, 31  ;;  %s2153_s29 = sand.u32 (!%p332_p9), 1, %s1741_s14  }
  0x17   : > { %s1753_s11 = smov (!%p332_p9), 32   ;;  %s1754_s12 = smov (!%p332_p9), 16  }
  0x18   : > { %s1757_s25 = smov (!%p332_p9), 64   ;;  %s2246_s28 = sshll.u32 (!%p332_p9), %s1838_s17, 7 }
  0x19   : > { %v410_v0 = vld [vmem:[%s2237_s3 + $0x8] sm:$0xff]  ;;  %v1751_v1 = vmov 0.0   ;;  %v409_v2 = vld [vmem:[%s2237_s3] sm:$0xff]  ;;  %vm1752_vm0 = vmmov 0   ;;  %v408_v3 = vld [vmem:[%s2252_s2 + $0x18] sm:$0xff]  ;;  %s385_s18 = scalar_select %p384_p10, %s1838_s17, 1 }
  0x1a   : > { %1467 = vmatprep.subr.mxu1 %v1751_v1  ;;  %1471 = vmatprep.mubr.msk.f32.mxu1 %vm1752_vm0, %v1751_v1  ;;  %v407_v4 = vld [vmem:[%s2252_s2 + $0x10] sm:$0xff]  ;;  %vm418_vm1 = vcmask 130048   ;;  %s2262_s27 = smov (!%p379_p11, %s1349_s27), 31  ;;  %v406_v6 = vld [vmem:[%s2252_s2 + $0x8] sm:$0xff]  ;;  %v405_v7 = vld [vmem:[%s2252_s2] sm:$0xff]  ;;  %vm702_vm2 = vcmask 261120  }
  0x1b   : > { %1468 = vmatpush3.msra.mxu1 %v410_v0  ;;  %1500 = vmatprep.subr.mxu0 %v408_v3  ;;  %s1351_s20 = sshll.u32 %s385_s18, 3  ;;  %s1350_s30 = sshll.u32 %s2262_s27, 3  ;;  %v492_v10 = vld [vmem:[%s2240_s6] sm:$0xff]  ;;  %vm508_vm3 = vcmask 64512   ;;  %v493_v29 = vld [vmem:[%s2240_s6 + $0x8] sm:$0xff]  ;;  %v494_v30 = vld [vmem:[%s2240_s6 + $0x10] sm:$0xff] }
  0x1c   : > { %1469 = vmatprep.subr.mxu1 %v1751_v1  ;;  %1501 = vmatpush3.msra.mxu0 %v408_v3  ;;  %s387_s26 = scalar_lea.vmem %s2253_s1, %s1351_s20  ;;  %s1897_s21 = scalar_lea.vmem %s2254_s0, %s1350_s30  ;;  %v1352_v25 = vld [vmem:[%s2238_s4] ss:$0 sm:$0xff]  ;;  %v495_v31 = vld [vmem:[%s2240_s6 + $0x18] sm:$0xff]  ;;  %v497_v33 = vld [vmem:[%s2240_s6 + $0x28] sm:$0xff]  ;;  %vm1125_vm4 = vcmask 392192   ;;  %vm1127_vm5 = vcmask 523264  }
  0x1d   : > { %1470 = vmatpush3.msra.mxu1 %v409_v2  ;;  %1502 = vmatprep.subr.mxu0 %v407_v4  ;;  %v404_v5 = vld [vmem:[%s387_s26] sm:$0xff]  ;;  %v389_v9 = vld [vmem:[%s1897_s21 + $0x8] sm:$0xff]  ;;  %v390_v11 = vld [vmem:[%s1897_s21 + $0x10] sm:$0xff]  ;;  %s2245_s30 = sshll.u32 %s2153_s29, 3  ;;  %s1755_s20 = smov 48   ;;  %vm1129_vm6 = vcmask 654336  }
  0x1e   : > { %1503 = vmatpush3.msra.mxu0 %v407_v4  ;;  %1472 = vmatmul.mubr.msk.f32.vlgmr.msra.gmra.mxu1 %vm418_vm1, %v404_v5  ;;  %v1900_v8 = vld [vmem:[%s1897_s21] sm:$0xff]  ;;  %v391_v12 = vld [vmem:[%s1897_s21 + $0x18] sm:$0xff]  ;;  %v393_v14 = vld [vmem:[%s1897_s21 + $0x28] sm:$0xff]  ;;  %s2158_s18 = scalar_lea.vmem [#allocation4], %s2245_s30  ;;  %s1758_s26 = smov 112   ;;  %vm1131_vm7 = vcmask 785408  }
  0x1f   : > { %1504 = vmatprep.subr.mxu0 %v406_v6  ;;  %1508 = vmatprep.mubr.msk.f32.mxu0 %vm702_vm2, %v1900_v8  ;;  %v392_v13 = vld [vmem:[%s1897_s21 + $0x20] sm:$0xff]  ;;  %v394_v15 = vld [vmem:[%s1897_s21 + $0x30] sm:$0xff]  ;;  %v395_v16 = vld [vmem:[%s1897_s21 + $0x38] sm:$0xff]  ;;  %s1759_s27 = smov 96   ;;  %vm1133_vm8 = vcmask 916480  }
  0x20   : > { %1505 = vmatpush3.msra.mxu0 %v406_v6  ;;  %1476 = vmatprep.mubr.msk.f32.mxu1 %vm508_vm3, %v492_v10  ;;  %v396_v17 = vld [vmem:[%s1897_s21 + $0x40] sm:$0xff]  ;;  %v397_v18 = vld [vmem:[%s1897_s21 + $0x48] sm:$0xff]  ;;  %v398_v19 = vld [vmem:[%s1897_s21 + $0x50] sm:$0xff] }
  0x21   : > { %1506 = vmatprep.subr.mxu0 %v405_v7  ;;  %v399_v20 = vld [vmem:[%s1897_s21 + $0x58] sm:$0xff]  ;;  %v400_v21 = vld [vmem:[%s1897_s21 + $0x60] sm:$0xff]  ;;  %v401_v22 = vld [vmem:[%s1897_s21 + $0x68] sm:$0xff] }
  0x22   : > { %1507 = vmatpush3.msra.mxu0 %v405_v7  ;;  %v402_v23 = vld [vmem:[%s1897_s21 + $0x70] sm:$0xff]  ;;  %v403_v24 = vld [vmem:[%s1897_s21 + $0x78] sm:$0xff]  ;;  %v496_v32 = vld [vmem:[%s2240_s6 + $0x20] sm:$0xff]  ;;  %s1756_s21 = smov 80  }
  0x23   : > { %1509 = vmatmul.mubr.msk.f32.vlgmr.msra.gmra.mxu0 %vm702_vm2, %v389_v9  ;;  %1567 = vmatprep.subr.mxu0 %v1751_v1  ;;  %v498_v34 = vld [vmem:[%s2240_s6 + $0x30] sm:$0xff]  ;;  %v499_v35 = vld [vmem:[%s2240_s6 + $0x38] sm:$0xff]  ;;  %v500_v36 = vld [vmem:[%s2240_s6 + $0x40] sm:$0xff] }
  0x24   : > { %1511 = vmatprep.mubr.msk.f32.mxu0 %vm702_vm2, %v390_v11  ;;  %1568 = vmatpush3.msra.mxu0 %v403_v24  ;;  %v501_v37 = vld [vmem:[%s2240_s6 + $0x48] sm:$0xff]  ;;  %v502_v38 = vld [vmem:[%s2240_s6 + $0x50] sm:$0xff]  ;;  %v503_v39 = vld [vmem:[%s2240_s6 + $0x58] sm:$0xff] }
  0x25   : > { %1569 = vmatprep.subr.mxu0 %v1751_v1  ;;  %v504_v40 = vld [vmem:[%s2240_s6 + $0x60] sm:$0xff]  ;;  %v505_v41 = vld [vmem:[%s2240_s6 + $0x68] sm:$0xff]  ;;  %v506_v42 = vld [vmem:[%s2240_s6 + $0x70] sm:$0xff] }
  0x26   : > { %1570 = vmatpush3.msra.mxu0 %v402_v23  ;;  %v507_v43 = vld [vmem:[%s2240_s6 + $0x78] sm:$0xff] }
  0x27   : > { %1512 = vmatmul.mubr.msk.f32.gmra.mxu0 %vm702_vm2, %v391_v12  ;;  %1571 = vmatprep.subr.mxu0 %v1751_v1 }
  0x28   : > { %1514 = vmatprep.mubr.msk.f32.mxu0 %vm702_vm2, %v392_v13  ;;  %1572 = vmatpush3.msra.mxu0 %v401_v22 }
  0x29   : > { %1573 = vmatprep.subr.mxu0 %v1751_v1 }
  0x2a   : > { %1574 = vmatpush3.msra.mxu0 %v400_v21 }
  0x2b   : > { %1515 = vmatmul.mubr.msk.f32.gmra.mxu0 %vm702_vm2, %v393_v14  ;;  %1575 = vmatprep.subr.mxu0 %v1751_v1 }
  0x2c   : > { %1517 = vmatprep.mubr.msk.f32.mxu0 %vm702_vm2, %v394_v15  ;;  %1576 = vmatpush3.msra.mxu0 %v399_v20 }
  0x2d   : > { %1577 = vmatprep.subr.mxu0 %v1751_v1 }
  0x2e   : > { %1578 = vmatpush3.msra.mxu0 %v398_v19 }
  0x2f   : > { %1518 = vmatmul.mubr.msk.f32.gmra.mxu0 %vm702_vm2, %v395_v16  ;;  %1579 = vmatprep.subr.mxu0 %v1751_v1 }
  0x30   : > { %1520 = vmatprep.mubr.msk.f32.mxu0 %vm702_vm2, %v396_v17  ;;  %1580 = vmatpush3.msra.mxu0 %v397_v18 }
  0x31   : > { %1581 = vmatprep.subr.mxu0 %v1751_v1 }
  0x32   : > { %1582 = vmatpush3.msra.mxu0 %v396_v17 }
  0x33   : > { %1521 = vmatmul.mubr.msk.f32.gmra.mxu0 %vm702_vm2, %v397_v18  ;;  %1583 = vmatprep.subr.mxu0 %v1751_v1 }
  0x34   : > { %1523 = vmatprep.mubr.msk.f32.mxu0 %vm702_vm2, %v398_v19  ;;  %1584 = vmatpush3.msra.mxu0 %v395_v16 }
  0x35   : > { %1585 = vmatprep.subr.mxu0 %v1751_v1 }
  0x36   : > { %1586 = vmatpush3.msra.mxu0 %v394_v15  ;;  %v2042_v15 = vld [vmem:[%s2239_s5] ss:$0 sm:$0xff] }
  0x37   : > { %1524 = vmatmul.mubr.msk.f32.gmra.mxu0 %vm702_vm2, %v399_v20  ;;  %1587 = vmatprep.subr.mxu0 %v1751_v1 }
  0x38   : > { %1526 = vmatprep.mubr.msk.f32.mxu0 %vm702_vm2, %v400_v21  ;;  %1588 = vmatpush3.msra.mxu0 %v393_v14 }
  0x39   : > { %1589 = vmatprep.subr.mxu0 %v1751_v1 }
  0x3a   : > { %1590 = vmatpush3.msra.mxu0 %v392_v13 }
  0x3b   : > { %1527 = vmatmul.mubr.msk.f32.gmra.mxu0 %vm702_vm2, %v401_v22  ;;  %1591 = vmatprep.subr.mxu0 %v1751_v1 }
  0x3c   : > { %1529 = vmatprep.mubr.msk.f32.mxu0 %vm702_vm2, %v402_v23  ;;  %1592 = vmatpush3.msra.mxu0 %v391_v12 }
  0x3d   : > { %1593 = vmatprep.subr.mxu0 %v1751_v1 }
  0x3e   : > { %1594 = vmatpush3.msra.mxu0 %v390_v11 }
  0x3f   : > { %1530 = vmatmul.mubr.msk.f32.gmra.mxu0 %vm702_vm2, %v403_v24  ;;  %1595 = vmatprep.subr.mxu0 %v1751_v1 }
  0x40   : > { %1599 = vmatprep.mubr.msk.f32.mxu0 %vm1752_vm0, %v1751_v1  ;;  %1596 = vmatpush3.msra.mxu0 %v389_v9 }
  0x41   : > { %1597 = vmatprep.subr.mxu0 %v1751_v1 }
  0x42   : > { %1598 = vmatpush3.msra.mxu0 %v1900_v8 }
  0xde   : > { %v488_v26 = vpop.f32.mrf.mxu1 }
  0xdf   : > { %v489_v27 = vadd.f32 %v1352_v25, %v488_v26 }
  0xe0   : > { %v1473_v28 = vpop.f32.mrf.mxu1 }
  0xe1   : > { %1474 = vmatprep.subr.mxu1 %v489_v27 }
  0xe2   : > { %1475 = vmatpush3.msra.mxu1 %v489_v27 }
  0xe3   : > { %1477 = vmatmul.mubr.msk.f32.vlgmr.msra.gmra.mxu1 %vm508_vm3, %v493_v29  ;;  %1532 = vmatprep.subr.mxu1 %v1751_v1  ;;  %v2023_v44 = vpop.f32.mrf.mxu0 }
  0xe4   : > { %1479 = vmatprep.mubr.msk.f32.mxu1 %vm508_vm3, %v494_v30 }
  0xe5   : > { %v2025_v45 = vpop.f32.mrf.mxu0 }
  0xe7   : > { %1480 = vmatmul.mubr.msk.f32.gmra.mxu1 %vm508_vm3, %v495_v31  ;;  %v2027_v46 = vpop.f32.mrf.mxu0 }
  0xe8   : > { %1482 = vmatprep.mubr.msk.f32.mxu1 %vm508_vm3, %v496_v32 }
  0xe9   : > { %v2029_v47 = vpop.f32.mrf.mxu0 }
  0xeb   : > { %1483 = vmatmul.mubr.msk.f32.gmra.mxu1 %vm508_vm3, %v497_v33  ;;  %v2031_v48 = vpop.f32.mrf.mxu0 }
  0xec   : > { %1485 = vmatprep.mubr.msk.f32.mxu1 %vm508_vm3, %v498_v34 }
  0xed   : > { %v837_v49 = vpop.f32.mrf.mxu0 }
  0xef   : > { %1486 = vmatmul.mubr.msk.f32.gmra.mxu1 %vm508_vm3, %v499_v35  ;;  %v1519_v50 = vpop.f32.mrf.mxu0 }
  0xf0   : > { %1488 = vmatprep.mubr.msk.f32.mxu1 %vm508_vm3, %v500_v36 }
  0xf1   : > { %v847_v51 = vpop.f32.mrf.mxu0 }
  0xf3   : > { %1489 = vmatmul.mubr.msk.f32.gmra.mxu1 %vm508_vm3, %v501_v37  ;;  %v1522_v54 = vpop.f32.mrf.mxu0 }
  0xf4   : > { %1491 = vmatprep.mubr.msk.f32.mxu1 %vm508_vm3, %v502_v38 }
  0xf5   : > { %v857_v57 = vpop.f32.mrf.mxu0 }
  0xf7   : > { %1492 = vmatmul.mubr.msk.f32.gmra.mxu1 %vm508_vm3, %v503_v39  ;;  %v1525_v60 = vpop.f32.mrf.mxu0 }
  0xf8   : > { %1494 = vmatprep.mubr.msk.f32.mxu1 %vm508_vm3, %v504_v40 }
  0xf9   : > { %v867_v63 = vpop.f32.mrf.mxu0 }
  0xfb   : > { %1495 = vmatmul.mubr.msk.f32.gmra.mxu1 %vm508_vm3, %v505_v41  ;;  %v1528_v3 = vpop.f32.mrf.mxu0 }
  0xfc   : > { %1497 = vmatprep.mubr.msk.f32.mxu1 %vm508_vm3, %v506_v42 }
  0xfd   : > { %v877_v6 = vpop.f32.mrf.mxu0 }
  0xff   : > { %1498 = vmatmul.mubr.msk.f32.gmra.mxu1 %vm508_vm3, %v507_v43  ;;  %v1531_v11 = vpop.f32.mrf.mxu0 }
 0x100   : > { %1564 = vmatprep.mubr.msk.f32.mxu1 %vm1752_vm0, %v1751_v1 }
 0x101   : > { %v887_v23 = vpop.f32.mrf.mxu0 }
 0x1a3   : > { %v2033_v52 = vpop.f32.mrf.mxu1 }
 0x1a5   : > { %v2035_v53 = vpop.f32.mrf.mxu1 }
 0x1a7   : > { %v2037_v55 = vpop.f32.mrf.mxu1 }
 0x1a9   : > { %v633_v56 = vpop.f32.mrf.mxu1 }
 0x1ab   : > { %v1484_v58 = vpop.f32.mrf.mxu1 }
 0x1ad   : > { %v643_v59 = vpop.f32.mrf.mxu1 }
 0x1ae   : > { %v838_v38 = vadd.f32 %v837_v49, %v643_v59 }
 0x1af   : > { %v1487_v61 = vpop.f32.mrf.mxu1 }
 0x1b0   : > { %v853_v39 = vadd.f32 %v1519_v50, %v1487_v61 }
 0x1b1   : > { %v653_v62 = vpop.f32.mrf.mxu1 }
 0x1b2   : > { %v848_v30 = vadd.f32 %v847_v51, %v653_v62  ;;  %v900_v62 = vmax.f32 %v838_v38, 0.0 }
 0x1b3   : > { %v1490_v0 = vpop.f32.mrf.mxu1 }
 0x1b4   : > { %v863_v31 = vadd.f32 %v1522_v54, %v1490_v0  ;;  %v902_v40 = vmax.f32 %v848_v30, 0.0  ;;  %v818_v0 = vadd.f32 %v2025_v45, %v2035_v53 }
 0x1b5   : > { %v663_v2 = vpop.f32.mrf.mxu1 }
 0x1b6   : > { %v858_v19 = vadd.f32 %v857_v57, %v663_v2  ;;  %v905_v41 = vmax.f32 %v863_v31, 0.0  ;;  %v828_v57 = vadd.f32 %v2029_v47, %v633_v56  ;;  %v925_v61 = vmul.f32 %v2042_v15, %v902_v40  ;;  %v994_v31 = vld [vmem:[%s2241_s7 + $0x50] sm:$0xff] }
 0x1b7   : > { %v1493_v4 = vpop.f32.mrf.mxu1  ;;  %v833_v47 = vadd.f32 %v2027_v46, %v2037_v55 }
 0x1b8   : > { %v873_v20 = vadd.f32 %v1525_v60, %v1493_v4  ;;  %v904_v32 = vmax.f32 %v858_v19, 0.0  ;;  %v843_v60 = vadd.f32 %v2031_v48, %v1484_v58  ;;  %v928_v59 = vmul.f32 %v2042_v15, %v905_v41 }
 0x1b9   : > { %v673_v5 = vpop.f32.mrf.mxu1  ;;  %v898_v56 = vmax.f32 %v828_v57, 0.0  ;;  %v953_v2 = vsel %vm702_vm2, %v925_v61, 0.0  ;;  %v923_v4 = vmul.f32 %v2042_v15, %v900_v62  ;;  %v899_v45 = vmax.f32 %v833_v47, 0.0  ;;  %v988_v62 = vld [vmem:[%s2241_s7 + $0x20] sm:$0xff] }
 0x1ba   : > { %v868_v9 = vadd.f32 %v867_v63, %v673_v5  ;;  %v907_v33 = vmax.f32 %v873_v20, 0.0  ;;  %v927_v54 = vmul.f32 %v2042_v15, %v904_v32  ;;  %v903_v63 = vmax.f32 %v853_v39, 0.0  ;;  %v991_v39 = vld [vmem:[%s2241_s7 + $0x38] sm:$0xff] }
 0x1bb   : > { %v1496_v7 = vpop.f32.mrf.mxu1  ;;  %v901_v48 = vmax.f32 %v843_v60, 0.0  ;;  %v962_v58 = vsel %vm702_vm2, %v928_v59, 0.0  ;;  %v823_v5 = vadd.f32 %v2023_v44, %v2033_v52  ;;  %v947_v46 = vsel %vm702_vm2, %v923_v4, 0.0 }
 0x1bc   : > { %v883_v8 = vadd.f32 %v1528_v3, %v1496_v7  ;;  %v906_v21 = vmax.f32 %v868_v9, 0.0  ;;  %v930_v51 = vmul.f32 %v2042_v15, %v907_v33  ;;  %v959_v50 = vsel %vm702_vm2, %v927_v54, 0.0  ;;  %v993_v33 = vld [vmem:[%s2241_s7 + $0x48] sm:$0xff] }
 0x1bd   : > { %v683_v10 = vpop.f32.mrf.mxu1  ;;  %v926_v3 = vmul.f32 %v2042_v15, %v903_v63  ;;  %v924_v55 = vmul.f32 %v2042_v15, %v901_v48  ;;  %v921_v7 = vmul.f32 %v2042_v15, %v898_v56  ;;  %v989_v54 = vld [vmem:[%s2241_s7 + $0x28] sm:$0xff] }
 0x1be   : > { %v909_v12 = vmax.f32 %v883_v8, 0.0  ;;  %v878_v13 = vadd.f32 %v877_v6, %v683_v10  ;;  %v929_v37 = vmul.f32 %v2042_v15, %v906_v21  ;;  %v968_v49 = vsel %vm702_vm2, %v930_v51, 0.0  ;;  %v998_v21 = vld [vmem:[%s2241_s7 + $0x70] sm:$0xff]  ;;  %v985_v56 = vld [vmem:[%s2241_s7 + $0x8] sm:$0xff] }
 0x1bf   : > { %v1499_v14 = vpop.f32.mrf.mxu1  ;;  %v896_v6 = vmax.f32 %v818_v0, 0.0  ;;  %v956_v53 = vsel %vm702_vm2, %v926_v3, 0.0  ;;  %v897_v8 = vmax.f32 %v823_v5, 0.0  ;;  %v950_v9 = vsel %vm702_vm2, %v924_v55, 0.0  ;;  %v986_v0 = vld [vmem:[%s2241_s7 + $0x10] sm:$0xff] }
 0x1c0   : > { %v908_v16 = vmax.f32 %v878_v13, 0.0  ;;  %v893_v17 = vadd.f32 %v1531_v11, %v1499_v14  ;;  %v932_v18 = vmul.f32 %v2042_v15, %v909_v12  ;;  %v965_v43 = vsel %vm702_vm2, %v929_v37, 0.0  ;;  %v992_v37 = vld [vmem:[%s2241_s7 + $0x40] sm:$0xff] }
 0x1c1   : > { %v693_v22 = vpop.f32.mrf.mxu1  ;;  %v941_v10 = vsel %vm702_vm2, %v921_v7, 0.0  ;;  %v922_v11 = vmul.f32 %v2042_v15, %v899_v45  ;;  %v919_v44 = vmul.f32 %v2042_v15, %v896_v6  ;;  %v920_v13 = vmul.f32 %v2042_v15, %v897_v8  ;;  %v983_v6 = vld [vmem:[%s2242_s8] sm:$0xff] }
 0x1c2   : > { %v911_v24 = vmax.f32 %v893_v17, 0.0  ;;  %v888_v25 = vadd.f32 %v887_v23, %v693_v22  ;;  %v974_v26 = vsel %vm702_vm2, %v932_v18, 0.0  ;;  %v931_v27 = vmul.f32 %v2042_v15, %v908_v16  ;;  %v999_v17 = vld [vmem:[%s2241_s7 + $0x78] sm:$0xff] }
 0x1c3   : > { %975 = vadd.xlane.f32.xlu1 %v974_v26  ;;  %v944_v52 = vsel %vm702_vm2, %v922_v11, 0.0  ;;  %v935_v12 = vsel %vm702_vm2, %v919_v44, 0.0  ;;  %v938_v14 = vsel %vm702_vm2, %v920_v13, 0.0 }
 0x1c4   : > { %v910_v28 = vmax.f32 %v888_v25, 0.0  ;;  %v934_v29 = vmul.f32 %v2042_v15, %v911_v24  ;;  %v971_v35 = vsel %vm702_vm2, %v931_v27, 0.0  ;;  %v996_v25 = vld [vmem:[%s2241_s7 + $0x60] sm:$0xff]  ;;  %v995_v27 = vld [vmem:[%s2241_s7 + $0x58] sm:$0xff] }
 0x1c6   : > { %v980_v34 = vsel %vm702_vm2, %v934_v29, 0.0  ;;  %v933_v36 = vmul.f32 %v2042_v15, %v910_v28  ;;  %v997_v15 = vld [vmem:[%s2241_s7 + $0x68] sm:$0xff] }
 0x1c7   : > { %981 = vadd.xlane.f32.xlu0 %v980_v34  ;;  %972 = vadd.xlane.f32.xlu1 %v971_v35 }
 0x1c8   : > { %v977_v42 = vsel %vm702_vm2, %v933_v36, 0.0 }
 0x1cb   : > { %978 = vadd.xlane.f32.xlu0 %v977_v42  ;;  %966 = vadd.xlane.f32.xlu1 %v965_v43  ;;  %v990_v42 = vld [vmem:[%s2241_s7 + $0x30] sm:$0xff] }
 0x1cf   : > { %969 = vadd.xlane.f32.xlu0 %v968_v49  ;;  %960 = vadd.xlane.f32.xlu1 %v959_v50  ;;  %v987_v50 = vld [vmem:[%s2241_s7 + $0x18] sm:$0xff] }
 0x1d3   : > { %963 = vadd.xlane.f32.xlu0 %v962_v58  ;;  %954 = vadd.xlane.f32.xlu1 %v953_v2  ;;  %v984_v2 = vld [vmem:[%s2241_s7] sm:$0xff] }
 0x1d7   : > { %957 = vadd.xlane.f32.xlu0 %v956_v53  ;;  %948 = vadd.xlane.f32.xlu1 %v947_v46 }
 0x1db   : > { %951 = vadd.xlane.f32.xlu0 %v950_v9  ;;  %942 = vadd.xlane.f32.xlu1 %v941_v10 }
 0x1df   : > { %945 = vadd.xlane.f32.xlu0 %v944_v52  ;;  %936 = vadd.xlane.f32.xlu1 %v935_v12 }
 0x1e3   : > { %939 = vadd.xlane.f32.xlu0 %v938_v14 }
 0x24c   : > { %v976_v16 = vpop.xlane.xlu1 %975 }
 0x24d   : > { %v1013_v26 = vmul.f32 %v997_v15, %v976_v16 }
 0x250   : > { %v982_v18 = vpop.xlane.xlu0 %981  ;;  %v973_v19 = vpop.xlane.xlu1 %972 }
 0x251   : > { %v1015_v20 = vmul.f32 %v999_v17, %v982_v18  ;;  %v1012_v30 = vmul.f32 %v996_v25, %v973_v19 }
 0x253   : > { %1533 = vmatpush3.msra.mxu1 %v1015_v20 }
 0x254   : > { %v979_v22 = vpop.xlane.xlu0 %978  ;;  %v967_v23 = vpop.xlane.xlu1 %966  ;;  %1534 = vmatprep.subr.mxu1 %v1751_v1 }
 0x255   : > { %v1014_v24 = vmul.f32 %v998_v21, %v979_v22  ;;  %v1010_v36 = vmul.f32 %v994_v31, %v967_v23 }
 0x257   : > { %1535 = vmatpush3.msra.mxu1 %v1014_v24 }
 0x258   : > { %1536 = vmatprep.subr.mxu1 %v1751_v1  ;;  %v970_v28 = vpop.xlane.xlu0 %969  ;;  %v961_v29 = vpop.xlane.xlu1 %960 }
 0x259   : > { %1537 = vmatpush3.msra.mxu1 %v1013_v26  ;;  %v1011_v32 = vmul.f32 %v995_v27, %v970_v28  ;;  %v1008_v41 = vmul.f32 %v992_v37, %v961_v29 }
 0x25a   : > { %1538 = vmatprep.subr.mxu1 %v1751_v1 }
 0x25b   : > { %1539 = vmatpush3.msra.mxu1 %v1012_v30 }
 0x25c   : > { %v964_v34 = vpop.xlane.xlu0 %963  ;;  %1540 = vmatprep.subr.mxu1 %v1751_v1  ;;  %v955_v35 = vpop.xlane.xlu1 %954 }
 0x25d   : > { %1541 = vmatpush3.msra.mxu1 %v1011_v32  ;;  %v1009_v38 = vmul.f32 %v993_v33, %v964_v34  ;;  %v1006_v60 = vmul.f32 %v990_v42, %v955_v35 }
 0x25e   : > { %1542 = vmatprep.subr.mxu1 %v1751_v1 }
 0x25f   : > { %1543 = vmatpush3.msra.mxu1 %v1010_v36 }
 0x260   : > { %v958_v40 = vpop.xlane.xlu0 %957  ;;  %1544 = vmatprep.subr.mxu1 %v1751_v1  ;;  %v949_v43 = vpop.xlane.xlu1 %948 }
 0x261   : > { %1545 = vmatpush3.msra.mxu1 %v1009_v38  ;;  %v1007_v51 = vmul.f32 %v991_v39, %v958_v40  ;;  %v1004_v61 = vmul.f32 %v988_v62, %v949_v43 }
 0x262   : > { %1546 = vmatprep.subr.mxu1 %v1751_v1 }
 0x263   : > { %1547 = vmatpush3.msra.mxu1 %v1008_v41 }
 0x264   : > { %v952_v57 = vpop.xlane.xlu0 %951  ;;  %1548 = vmatprep.subr.mxu1 %v1751_v1  ;;  %v943_v49 = vpop.xlane.xlu1 %942 }
 0x265   : > { %1549 = vmatpush3.msra.mxu1 %v1007_v51  ;;  %v1005_v63 = vmul.f32 %v989_v54, %v952_v57  ;;  %v1002_v58 = vmul.f32 %v986_v0, %v943_v49 }
 0x266   : > { %1550 = vmatprep.subr.mxu1 %v1751_v1 }
 0x267   : > { %1551 = vmatpush3.msra.mxu1 %v1006_v60 }
 0x268   : > { %v946_v59 = vpop.xlane.xlu0 %945  ;;  %1552 = vmatprep.subr.mxu1 %v1751_v1  ;;  %v937_v3 = vpop.xlane.xlu1 %936 }
 0x269   : > { %1553 = vmatpush3.msra.mxu1 %v1005_v63  ;;  %v1003_v47 = vmul.f32 %v987_v50, %v946_v59  ;;  %v1000_v5 = vmul.f32 %v984_v2, %v937_v3 }
 0x26a   : > { %1554 = vmatprep.subr.mxu1 %v1751_v1 }
 0x26b   : > { %1555 = vmatpush3.msra.mxu1 %v1004_v61 }
 0x26c   : > { %v940_v48 = vpop.xlane.xlu0 %939  ;;  %1556 = vmatprep.subr.mxu1 %v1751_v1 }
 0x26d   : > { %1557 = vmatpush3.msra.mxu1 %v1003_v47  ;;  %v1001_v4 = vmul.f32 %v985_v56, %v940_v48 }
 0x26e   : > { %1558 = vmatprep.subr.mxu1 %v1751_v1 }
 0x26f   : > { %1559 = vmatpush3.msra.mxu1 %v1002_v58 }
 0x270   : > { %1560 = vmatprep.subr.mxu1 %v1751_v1 }
 0x271   : > { %1561 = vmatpush3.msra.mxu1 %v1001_v4 }
 0x272   : > { %1562 = vmatprep.subr.mxu1 %v1751_v1 }
 0x273   : > { %1563 = vmatpush3.msra.mxu1 %v1000_v5 }
 0x274   : > { %1565 = vmatmul.mubr.f32.vlgmr.msra.gmra.mxu1 %v983_v6 }
 0x334   : > { %v1082_v45 = vpop.f32.mrf.mxu1 }
 0x335   : > { %v1086_v53 = vsel %vm418_vm1, %v1082_v45, -inf }
 0x336   : > { %1087 = vmax.xlane.f32.xlu0 %v1086_v53  ;;  %v1566_v46 = vpop.f32.mrf.mxu1 }
 0x3bf   : > { %v1088_v55 = vpop.xlane.xlu0 %1087 }
 0x3c0   : > { %v1089_v7 = vsub.f32 %v1082_v45, %v1088_v55 }
 0x3c2   : > { %v1090_v8 = vmul.f32 1.442695, %v1089_v7 }
 0x3c4   : > { %1655 = vpow2.f32 %v1090_v8 }
 0x3d1   : > { %v1656_v9 = vpop.eup %1655 }
 0x3d2   : > { %v1092_v10 = vsel %vm418_vm1, %v1656_v9, 0.0 }
 0x3d3   : > { %1093 = vadd.xlane.f32.xlu1 %v1092_v10 }
 0x45c   : > { %v1094_v11 = vpop.xlane.xlu1 %1093 }
 0x45d   : > { %1657 = vrcp.f32 %v1094_v11 }
 0x46a   : > { %v1658_v44 = vpop.eup %1657 }
 0x46b   : > { %v1096_v1 = vmul.f32 %v1658_v44, %v1094_v11 }
 0x46d   : > { %v1097_v52 = vsub.f32 2.0, %v1096_v1 }
 0x46f   : > { %v1098_v12 = vmul.f32 %v1658_v44, %v1097_v52 }
 0x471   : > { %v1099_v13 = vmul.f32 %v1656_v9, %v1098_v12 }
 0x473   : > { %1105 = vrot.lane.b32.xlu1 %v1099_v13, %s1753_s11  ;;  %1102 = vrot.lane.b32.xlu0 %v1099_v13, %s1754_s12  ;;  %1100 = vst.msk [vmem:[%s2158_s18] sm:$0xff] %vm418_vm1, %v1099_v13 }
 0x477   : > { %1108 = vrot.lane.b32.xlu1 %v1099_v13, %s1755_s20  ;;  %1114 = vrot.lane.b32.xlu0 %v1099_v13, %s1756_s21  ;;  %s1238_s20 = scalar_lea.hbm %s2244_s10, %s2246_s28  ;;  %s1240_s21 = sshll.u32 %s2158_s18, 4  ;;  %s1241_s21 = int_to_ptr.vmem [resolvable:$true] %s1240_s21 }
 0x47b   : > { %1111 = vrot.lane.b32.xlu1 %v1099_v13, %s1757_s25  ;;  %1120 = vrot.lane.b32.xlu0 %v1099_v13, %s1758_s26  ;;  %s1214_s25 = scalar_lea.sflag [#allocation5], %s2153_s29  ;;  %s1659_s26 = scalar_lea.vmem %s1241_s21, 128 }
 0x47c   : > { %p1660_p12 = scmp.ne.s32.totalorder %s1241_s21, %s1659_s26 }
 0x47e   : > { %p1661_p13 = pnand %p1660_p12, %p1855_p5 }
 0x47f   : > { %1117 = vrot.lane.b32.xlu1 %v1099_v13, %s1759_s27  ;;  %s1760_s27 = smov [#allocation4]  }
 0x480   : > { %p1662_p0 = pneg %p1661_p13  ;;  %s1663_s30 = sshll.u32 %s1760_s27, 4  ;;  %s1664_s30 = int_to_ptr.vmem [resolvable:$false] %s1663_s30 }
 0x481   : > { %s1665_s0 = scalar_lea.vmem %s1664_s30, 256  ;;  %p1666_p1 = scmp.lt.s32.totalorder %s1241_s21, %s1664_s30 }
 0x482   : > { %p1667_p2 = scmp.lt.s32.totalorder %s1665_s0, %s1659_s26 }
 0x484   : > { %p1668_p3 = por %p1667_p2, %p1666_p1 }
 0x486   : > { %p1669_p4 = pnand %p1668_p3, %p1662_p0 }
 0x4e5   : > { %v1106_v14 = vpop.permute.xlu1 %1105  ;;  %v1103_v16 = vpop.permute.xlu0 %1102 }
 0x4e6   : > { %v1123_v17 = vsel %vm418_vm1, %v1099_v13, %v1103_v16 }
 0x4e7   : > { %v1124_v19 = vsel %vm702_vm2, %v1123_v17, %v1106_v14 }
 0x4e9   : > { %v1109_v18 = vpop.permute.xlu1 %1108  ;;  %v1115_v20 = vpop.permute.xlu0 %1114 }
 0x4ea   : > { %v1126_v21 = vsel %vm1125_vm4, %v1124_v19, %v1109_v18 }
 0x4ed   : > { %v1112_v15 = vpop.permute.xlu1 %1111  ;;  %v1121_v25 = vpop.permute.xlu0 %1120 }
 0x4ee   : > { %v1128_v22 = vsel %vm1127_vm5, %v1126_v21, %v1112_v15 }
 0x4ef   : > { %v1130_v24 = vsel %vm1129_vm6, %v1128_v22, %v1115_v20 }
 0x4f1   : > { %v1118_v23 = vpop.permute.xlu1 %1117 }
 0x4f2   : > { %v1132_v26 = vsel %vm1131_vm7, %v1130_v24, %v1118_v23 }
 0x4f3   : > { %v1134_v27 = vsel %vm1133_vm8, %v1132_v26, %v1121_v25 }
 0x4f4   : > { %v1136_v28 = vmul.f32 %v1134_v27, %v983_v6 }
 0x4f6   : > { %1600 = vmatmul.mubr.f32.vlgmr.msra.gmra.mxu0 %v1136_v28 }
 0x4f7   : > { %1672 = shalt.err (!%p1669_p4)
}
 0x4f8   : > { %s1673_s1 = scalar_lea.hbm %s1238_s20, 128  ;;  %s1677_s12 = scalar_lea.hbm %s2244_s10, 256 }
 0x4f9   : > { %p1674_p7 = scmp.ne.s32.totalorder %s1238_s20, %s1673_s1  ;;  %p1678_p10 = scmp.lt.s32.totalorder %s1238_s20, %s2244_s10 }
 0x4fa   : > { %p1679_p11 = scmp.lt.s32.totalorder %s1677_s12, %s1673_s1 }
 0x4fb   : > { %p1675_p8 = pnand %p1674_p7, %p1855_p5 }
 0x4fc   : > { %p1680_p12 = por %p1679_p11, %p1678_p10 }
 0x4fd   : > { %p1676_p9 = pneg %p1675_p8 }
 0x4ff   : > { %p1681_p13 = pnand %p1680_p12, %p1676_p9 }
 0x501   : > { %1684 = shalt.err (!%p1681_p13)
}
 0x502   : > { %1603 = dma.vmem_to_hbm [thread:$0]  (%p1855_p5), %s1241_s21, 128, %s1238_s20, %s1214_s25  }
 0x503   : > { %s2255_s0 = sshll.u32 %s2153_s29, 3  ;;  %s2256_s27 = sshll.u32 %s1838_s17, 7 }
 0x504   : > { %s370_s30 = scalar_lea.vmem [#allocation2], %s2255_s0  ;;  %s2191_s2 = scalar_lea.hbm %s2243_s9, %s2256_s27 }
 0x505   : > { %s1227_s26 = sshll.u32 %s370_s30, 4  ;;  %s1209_s1 = scalar_lea.sflag [#allocation3], %s2153_s29  ;;  %s2193_s26 = int_to_ptr.vmem [resolvable:$true] %s1227_s26 }
 0x506   : > { %s1685_s28 = scalar_lea.vmem %s2193_s26, 128  ;;  %s1761_s17 = smov [#allocation2]  }
 0x507   : > { %p1686_p0 = scmp.ne.s32.totalorder %s2193_s26, %s1685_s28  ;;  %s1689_s20 = sshll.u32 %s1761_s17, 4  ;;  %s1690_s20 = int_to_ptr.vmem [resolvable:$false] %s1689_s20 }
 0x508   : > { %s1691_s21 = scalar_lea.vmem %s1690_s20, 256  ;;  %p1692_p3 = scmp.lt.s32.totalorder %s2193_s26, %s1690_s20 }
 0x509   : > { %p1687_p1 = pnand %p1686_p0, %p1855_p5  ;;  %p1693_p4 = scmp.lt.s32.totalorder %s1691_s21, %s1685_s28 }
 0x50b   : > { %p1688_p2 = pneg %p1687_p1  ;;  %p1694_p7 = por %p1693_p4, %p1692_p3 }
 0x50d   : > { %p1695_p8 = pnand %p1694_p7, %p1688_p2 }
 0x5b6   : > { %v1203_v29 = vpop.f32.mrf.mxu0 }
 0x5b7   : > { %1207 = vst.msk [vmem:[%s370_s30] sm:$0xff] %vm702_vm2, %v1203_v29 }
 0x5b8   : > { %v1601_v30 = vpop.f32.mrf.mxu0 }
 0x5b9   : > { %1698 = shalt.err (!%p1695_p8)
}
 0x5ba   : > { %s1699_s25 = scalar_lea.hbm %s2191_s2, 128  ;;  %s1703_s0 = scalar_lea.hbm %s2243_s9, 256 }
 0x5bb   : > { %p1700_p9 = scmp.ne.s32.totalorder %s2191_s2, %s1699_s25  ;;  %p1704_p12 = scmp.lt.s32.totalorder %s2191_s2, %s2243_s9 }
 0x5bc   : > { %p1705_p13 = scmp.lt.s32.totalorder %s1703_s0, %s1699_s25 }
 0x5bd   : > { %p1701_p10 = pnand %p1700_p9, %p1855_p5 }
 0x5be   : > { %p1706_p0 = por %p1705_p13, %p1704_p12 }
 0x5bf   : > { %p1702_p11 = pneg %p1701_p10 }
 0x5c1   : > { %p1707_p1 = pnand %p1706_p0, %p1702_p11 }
 0x5c3   : > { %1710 = shalt.err (!%p1707_p1)
}
 0x5c4   : > { %1602 = dma.vmem_to_hbm [thread:$0]  (%p1855_p5), %s2193_s26, 128, %s2191_s2, %s1209_s1  }
 0x5c5 PF: > { %p1613_p2 = scmp.ge.s32.totalorder %s1749_s16, 2  ;;  %s1252_s18 = sand.u32 1, %s1737_s13  }
 0x5c6   : > { %s1253_s11 = scalar_lea.sflag [#allocation3], %s1252_s18 }
 0x5c7   : > { %p1607_p3 = pnand %p1613_p2, %p1859_p6 }
 0x5c9   : > { %p1608_p4 = pneg %p1607_p3 }
 0x5cb   : > { %1728 = dma.done.wait (%p1608_p4), %s1253_s11, 128  }
 0x5cc   : > { %1730 = vsyncadd (%p1608_p4), %s1253_s11, 4294967168  ;;  %s1262_s28 = scalar_lea.sflag [#allocation5], %s1252_s18 }
 0x5cd   : > { %1732 = dma.done.wait (%p1608_p4), %s1262_s28, 128  }
 0x5ce   : > { %1734 = vsyncadd (%p1608_p4), %s1262_s28, 4294967168  ;;  %p24_p5 = scmp.ge.s32.totalorder %s1842_s19, 4   ;;  %s2257_s13 = smov %s1741_s14 }
 0x5cf   : > { %s2258_s14 = smov %s1745_s15  ;;  %s2259_s15 = smov %s1853_s22 }
 0x5d0   : > { %s2260_s16 = smov %s1842_s19  ;;  %26 = sbr.rel (!%p24_p5) target bundleno = 9 (0x9), region = 111 }
 0x5d5   :  { %1267 = vsyncpa [#allocation3], 1 }
 0x5d6   :  { %1269 = vsyncpa [#allocation3 + $0x1], 1 }
 0x5d7   :  { %1270 = vsyncpa [#allocation5], 1 }
 0x5d8   :  { %1272 = vsyncpa [#allocation5 + $0x1], 1 }

</bundles_post_ra>
